<compile_context>
chip_gen: v6e
topology: v6e:2x2x1
jax: 0.10.0
libtpu: 0.0.40
codegen_flags: <defaults>
</compile_context>

<pallas_src>
import math

import jax
import jax.numpy as jnp
from jax.experimental import pallas as pl
from jax.experimental.pallas import tpu as pltpu


PARAM_DTYPE = jnp.bfloat16       # weight / activation storage dtype (f32 accumulation)
_HIDDEN_TILE_TARGET = 512        # MLP hidden (4C) tile width   (multiple of 128)
_QKV_TILE_TARGET = 1024          # fused QKV output tile width  (multiple of 128)
_ATTN_T_TILE_TARGET = 256        # q / kv sequence tile for flash attention

_TUNING = None


def _tuning():
    """Per-generation tiling knobs (v5e/v6e: 128 MiB VMEM, v7x: 64 MiB)."""
    global _TUNING
    if _TUNING is None:
        try:
            vmem = int(pltpu.get_tpu_info().vmem_capacity_bytes)
        except Exception:                      # unknown attr / no info -> conservative
            vmem = 64 * 1024 * 1024
        if vmem >= 100 * 1024 * 1024:          # v5e / v6e
            _TUNING = dict(row_tile=1024, lane_tile=2048,
                           vmem_limit=96 * 1024 * 1024)
        else:                                   # v7x (64 MiB physical VMEM)
            _TUNING = dict(row_tile=512, lane_tile=1024,
                           vmem_limit=32 * 1024 * 1024)
    return _TUNING


# ----------------------------------------------------------------------------
# Tiling helpers
# ----------------------------------------------------------------------------

def _round_up(x, m):
    return ((x + m - 1) // m) * m


def _pick_lane_tile(n, target):
    """Largest multiple of 128 dividing n that is <= target; else full n."""
    if n <= target or n % 128 != 0:
        return n
    t = (target // 128) * 128
    while t >= 128:
        if n % t == 0:
            return t
        t -= 128
    return n


def _pick_sublane_tile(n, target):
    if n <= target:
        return n
    t = (target // 8) * 8
    while t >= 8:
        if n % t == 0:
            return t
        t -= 8
    return n


def _row_plan(M, target):
    """Row tile (multiple of 8) + padded row count; pad instead of one giant tile."""
    tm = min(target, _round_up(M, 8))
    return tm, _round_up(M, tm)


def _pad_rows(x, mp):
    m = x.shape[0]
    if m == mp:
        return x
    return jnp.pad(x, ((0, mp - m),) + ((0, 0),) * (x.ndim - 1))


# ----------------------------------------------------------------------------
# Kernel 1: fused ln_1 + QKV projection, N-tiled over the 3C output columns
# ----------------------------------------------------------------------------

def _ln_qkv_kernel(x_ref, g_ref, b_ref, w_ref, bias_ref, o_ref, ln_sc):
    # o[:, j-tile] = (LayerNorm(x) * g + b) @ w[:, j-tile] + bias[j-tile]
    @pl.when(pl.program_id(1) == 0)
    def _():
        x = x_ref[...].astype(jnp.float32)
        mu = jnp.mean(x, axis=-1, keepdims=True)
        var = jnp.mean((x - mu) * (x - mu), axis=-1, keepdims=True)
        h = (x - mu) * jax.lax.rsqrt(var + 1e-5)
        ln_sc[...] = (h * g_ref[...] + b_ref[...]).astype(ln_sc.dtype)

    acc = jnp.dot(ln_sc[...], w_ref[...], preferred_element_type=jnp.float32)
    o_ref[...] = (acc + bias_ref[...]).astype(o_ref.dtype)


def ln_qkv(x2d, g, b, w, bias):
    M, C = x2d.shape
    N = w.shape[1]
    tun = _tuning()
    tm, Mp = _row_plan(M, tun["row_tile"])
    tn = _pick_lane_tile(N, _QKV_TILE_TARGET)
    xp = _pad_rows(x2d, Mp)
    out = pl.pallas_call(
        _ln_qkv_kernel,
        out_shape=jax.ShapeDtypeStruct((Mp, N), x2d.dtype),
        grid=(Mp // tm, N // tn),
        in_specs=[
            pl.BlockSpec((tm, C), lambda i, j: (i, 0)),
            pl.BlockSpec((1, C), lambda i, j: (0, 0)),
            pl.BlockSpec((1, C), lambda i, j: (0, 0)),
            pl.BlockSpec((C, tn), lambda i, j: (0, j)),
            pl.BlockSpec((1, tn), lambda i, j: (0, j)),
        ],
        out_specs=pl.BlockSpec((tm, tn), lambda i, j: (i, j)),
        scratch_shapes=[pltpu.VMEM((tm, C), x2d.dtype)],
        compiler_params=pltpu.CompilerParams(
            dimension_semantics=("parallel", "arbitrary"),
            vmem_limit_bytes=tun["vmem_limit"]),
    )(xp, g, b, w, bias.reshape(1, N))
    return out[:M] if Mp != M else out


# ----------------------------------------------------------------------------
# Kernel 2: flash (online-softmax) causal attention, grid = (B*heads, q, kv)
# ----------------------------------------------------------------------------

def _flash_attention_kernel(q_ref, k_ref, v_ref, o_ref, m_sc, l_sc, acc_sc):
    tq = q_ref.shape[1]
    tkv = k_ref.shape[1]
    hd = q_ref.shape[2]
    scale = 1.0 / math.sqrt(hd)
    qi = pl.program_id(1)
    ki = pl.program_id(2)

    @pl.when(ki == 0)
    def _init():
        m_sc[...] = jnp.full((tq, 1), -jnp.inf, jnp.float32)
        l_sc[...] = jnp.zeros((tq, 1), jnp.float32)
        acc_sc[...] = jnp.zeros((tq, hd), jnp.float32)

    q_start = qi * tq
    k_start = ki * tkv

    @pl.when(k_start <= q_start + tq - 1)          # skip fully-masked kv tiles
    def _compute():
        s = jax.lax.dot_general(q_ref[0], k_ref[0], (((1,), (1,)), ((), ())),
                                preferred_element_type=jnp.float32) * scale
        row = q_start + jax.lax.broadcasted_iota(jnp.int32, (tq, tkv), 0)
        col = k_start + jax.lax.broadcasted_iota(jnp.int32, (tq, tkv), 1)
        s = jnp.where(row >= col, s, -jnp.inf)

        m_prev = m_sc[...]
        m_new = jnp.maximum(m_prev, jnp.max(s, axis=-1, keepdims=True))
        alpha = jnp.exp(m_prev - m_new)
        p = jnp.exp(s - m_new)
        l_sc[...] = alpha * l_sc[...] + jnp.sum(p, axis=-1, keepdims=True)
        acc_sc[...] = alpha * acc_sc[...] + jnp.dot(
            p.astype(v_ref.dtype), v_ref[0], preferred_element_type=jnp.float32)
        m_sc[...] = m_new

    @pl.when(ki == pl.num_programs(2) - 1)
    def _finalize():
        o_ref[0] = (acc_sc[...] / l_sc[...]).astype(o_ref.dtype)


def causal_attention(qkv3, n_head):
    # qkv3: (B, T, 3C) fused projection output, columns ordered [q | k | v].
    B, T, C3 = qkv3.shape
    C = C3 // 3
    hd = C // n_head
    tun = _tuning()
    tt = _pick_sublane_tile(T, _ATTN_T_TILE_TARGET)
    grid = (B * n_head, T // tt, T // tt)
    scratch = [pltpu.VMEM((tt, 1), jnp.float32),
               pltpu.VMEM((tt, 1), jnp.float32),
               pltpu.VMEM((tt, hd), jnp.float32)]
    cp = pltpu.CompilerParams(
        dimension_semantics=("parallel", "parallel", "arbitrary"),
        vmem_limit_bytes=tun["vmem_limit"])

    if hd % 128 == 0:
        # Heads sliced straight out of the fused QKV tensor by the BlockSpec:
        # no host transpose, each head writes its own lane-dense output slice.
        return pl.pallas_call(
            _flash_attention_kernel,
            out_shape=jax.ShapeDtypeStruct((B, T, C), qkv3.dtype),
            grid=grid,
            in_specs=[
                pl.BlockSpec((1, tt, hd),
                             lambda bh, qi, ki: (bh // n_head, qi, bh % n_head)),
                pl.BlockSpec((1, tt, hd),
                             lambda bh, qi, ki: (bh // n_head, ki,
                                                 n_head + bh % n_head)),
                pl.BlockSpec((1, tt, hd),
                             lambda bh, qi, ki: (bh // n_head, ki,
                                                 2 * n_head + bh % n_head)),
            ],
            out_specs=pl.BlockSpec(
                (1, tt, hd), lambda bh, qi, ki: (bh // n_head, qi, bh % n_head)),
            scratch_shapes=scratch,
            compiler_params=cp,
        )(qkv3, qkv3, qkv3)

    # Fallback for head_dim not a multiple of 128: one head-major host transpose
    # so head_dim is the full trailing block dim (always BlockSpec-legal).
    qkv5 = qkv3.reshape(B, T, 3, n_head, hd).transpose(2, 0, 3, 1, 4)
    qkv5 = qkv5.reshape(3, B * n_head, T, hd)
    q, k, v = qkv5[0], qkv5[1], qkv5[2]
    out = pl.pallas_call(
        _flash_attention_kernel,
        out_shape=jax.ShapeDtypeStruct((B * n_head, T, hd), qkv3.dtype),
        grid=grid,
        in_specs=[
            pl.BlockSpec((1, tt, hd), lambda bh, qi, ki: (bh, qi, 0)),
            pl.BlockSpec((1, tt, hd), lambda bh, qi, ki: (bh, ki, 0)),
            pl.BlockSpec((1, tt, hd), lambda bh, qi, ki: (bh, ki, 0)),
        ],
        out_specs=pl.BlockSpec((1, tt, hd), lambda bh, qi, ki: (bh, qi, 0)),
        scratch_shapes=scratch,
        compiler_params=cp,
    )(q, k, v)
    return out.reshape(B, n_head, T, hd).transpose(0, 2, 1, 3).reshape(B, T, C)


# ----------------------------------------------------------------------------
# Kernel 3: fused attention epilogue + ln_2 + MLP + residual (hidden-dim tiled)
# ----------------------------------------------------------------------------

def _epilogue_mlp_kernel(y_ref, x_ref, wp_ref, bp_ref, g_ref, b_ref,
                         w1_ref, b1_ref, w2_ref, b2_ref,
                         xout_ref, xres_ref, xres_sc, ln_sc, acc_sc):
    # step 0:  x_res = x + y @ wproj + bproj ; cache LN(x_res) ; zero accumulator
    # step h:  acc  += GELU(LN(x_res) @ w1[:, h] + b1[h]) @ w2[h, :]
    # last:    x_out = x_res + acc + b2
    h = pl.program_id(1)

    @pl.when(h == 0)
    def _init():
        proj = jnp.dot(y_ref[...], wp_ref[...], preferred_element_type=jnp.float32)
        xres = x_ref[...].astype(jnp.float32) + proj + bp_ref[...]
        xres_sc[...] = xres
        xres_ref[...] = xres.astype(xres_ref.dtype)
        mu = jnp.mean(xres, axis=-1, keepdims=True)
        var = jnp.mean((xres - mu) * (xres - mu), axis=-1, keepdims=True)
        ln = (xres - mu) * jax.lax.rsqrt(var + 1e-5) * g_ref[...] + b_ref[...]
        ln_sc[...] = ln.astype(ln_sc.dtype)
        acc_sc[...] = jnp.zeros(acc_sc.shape, jnp.float32)

    hid = jnp.dot(ln_sc[...], w1_ref[...],
                  preferred_element_type=jnp.float32) + b1_ref[...]
    hid = jax.nn.gelu(hid, approximate=False)          # nn.GELU() default (erf)
    acc_sc[...] += jnp.dot(hid.astype(w2_ref.dtype), w2_ref[...],
                           preferred_element_type=jnp.float32)

    @pl.when(h == pl.num_programs(1) - 1)
    def _finalize():
        xout_ref[...] = (xres_sc[...] + acc_sc[...] + b2_ref[...]).astype(xout_ref.dtype)


def attn_epilogue_mlp(y2d, x2d, wproj, bproj, g2, b2ln, w1, b1, w2, b2):
    M, C = x2d.shape
    Hd = w1.shape[1]
    tun = _tuning()
    tm, Mp = _row_plan(M, tun["row_tile"])
    th = _pick_lane_tile(Hd, _HIDDEN_TILE_TARGET)
    yp = _pad_rows(y2d, Mp)
    xp = _pad_rows(x2d, Mp)
    x_out, x_res = pl.pallas_call(
        _epilogue_mlp_kernel,
        out_shape=(jax.ShapeDtypeStruct((Mp, C), x2d.dtype),
                   jax.ShapeDtypeStruct((Mp, C), x2d.dtype)),
        grid=(Mp // tm, Hd // th),
        in_specs=[
            pl.BlockSpec((tm, C), lambda i, h: (i, 0)),      # attention output y
            pl.BlockSpec((tm, C), lambda i, h: (i, 0)),      # residual input x
            pl.BlockSpec((C, C), lambda i, h: (0, 0)),       # wproj
            pl.BlockSpec((1, C), lambda i, h: (0, 0)),       # bproj
            pl.BlockSpec((1, C), lambda i, h: (0, 0)),       # ln2 gamma
            pl.BlockSpec((1, C), lambda i, h: (0, 0)),       # ln2 beta
            pl.BlockSpec((C, th), lambda i, h: (0, h)),      # w1 hidden tile
            pl.BlockSpec((1, th), lambda i, h: (0, h)),      # b1 hidden tile
            pl.BlockSpec((th, C), lambda i, h: (h, 0)),      # w2 hidden tile
            pl.BlockSpec((1, C), lambda i, h: (0, 0)),       # b2
        ],
        out_specs=(pl.BlockSpec((tm, C), lambda i, h: (i, 0)),
                   pl.BlockSpec((tm, C), lambda i, h: (i, 0))),
        scratch_shapes=[pltpu.VMEM((tm, C), jnp.float32),    # x_res (f32)
                        pltpu.VMEM((tm, C), x2d.dtype),      # LN(x_res) cache
                        pltpu.VMEM((tm, C), jnp.float32)],   # MLP accumulator
        compiler_params=pltpu.CompilerParams(
            dimension_semantics=("parallel", "arbitrary"),
            vmem_limit_bytes=tun["vmem_limit"]),
    )(yp, xp, wproj, bproj.reshape(1, C), g2, b2ln,
      w1, b1.reshape(1, Hd), w2, b2.reshape(1, C))
    if Mp != M:
        x_out, x_res = x_out[:M], x_res[:M]
    return x_out, x_res


# ----------------------------------------------------------------------------
# Kernel 4: final LayerNorm
# ----------------------------------------------------------------------------

def _layernorm_kernel(x_ref, g_ref, b_ref, o_ref):
    x = x_ref[...].astype(jnp.float32)
    mu = jnp.mean(x, axis=-1, keepdims=True)
    var = jnp.mean((x - mu) * (x - mu), axis=-1, keepdims=True)
    y = (x - mu) * jax.lax.rsqrt(var + 1e-5)
    o_ref[...] = (y * g_ref[...] + b_ref[...]).astype(o_ref.dtype)


def layernorm(x2d, g, b):
    M, C = x2d.shape
    tun = _tuning()
    tm, Mp = _row_plan(M, tun["row_tile"])
    xp = _pad_rows(x2d, Mp)
    out = pl.pallas_call(
        _layernorm_kernel,
        out_shape=jax.ShapeDtypeStruct((Mp, C), x2d.dtype),
        grid=(Mp // tm,),
        in_specs=[
            pl.BlockSpec((tm, C), lambda i: (i, 0)),
            pl.BlockSpec((1, C), lambda i: (0, 0)),
            pl.BlockSpec((1, C), lambda i: (0, 0)),
        ],
        out_specs=pl.BlockSpec((tm, C), lambda i: (i, 0)),
        compiler_params=pltpu.CompilerParams(
            dimension_semantics=("parallel",),
            vmem_limit_bytes=tun["vmem_limit"]),
    )(xp, g, b)
    return out[:M] if Mp != M else out


# ----------------------------------------------------------------------------
# Kernel 5: bias-free lm_head matmul (vocab axis outer: weight tile read once)
# ----------------------------------------------------------------------------

def _lm_head_kernel(x_ref, w_ref, o_ref):
    o_ref[...] = jnp.dot(x_ref[...], w_ref[...],
                         preferred_element_type=jnp.float32).astype(o_ref.dtype)


def lm_head_matmul(x2d, w):
    M, K = x2d.shape
    N = w.shape[1]
    tun = _tuning()
    tm, Mp = _row_plan(M, tun["row_tile"])
    tn = _pick_lane_tile(N, tun["lane_tile"])
    xp = _pad_rows(x2d, Mp)
    out = pl.pallas_call(
        _lm_head_kernel,
        out_shape=jax.ShapeDtypeStruct((Mp, N), jnp.float32),
        grid=(N // tn, Mp // tm),       # vocab outer: each lm weight tile is read
        in_specs=[                      # once; the smaller x slab is re-streamed.
            pl.BlockSpec((tm, K), lambda j, i: (i, 0)),
            pl.BlockSpec((K, tn), lambda j, i: (0, j)),
        ],
        out_specs=pl.BlockSpec((tm, tn), lambda j, i: (i, j)),
        compiler_params=pltpu.CompilerParams(
            dimension_semantics=("parallel", "arbitrary"),
            vmem_limit_bytes=tun["vmem_limit"]),
    )(xp, w)
    return out[:M] if Mp != M else out


# ----------------------------------------------------------------------------
# Model (parameter init + forward glue)
# ----------------------------------------------------------------------------

def init_params(key, cfg):
    C = cfg["n_embd"]
    V = cfg["vocab_size"]
    BS = cfg["block_size"]
    bridge_size = int(cfg["bridge_neurons_pct"] * C)
    keys = iter(jax.random.split(key, 8 + 8 * cfg["n_layer"]))

    def nrm(shape, dtype=PARAM_DTYPE):
        return (jax.random.normal(next(keys), shape, jnp.float32) * 0.02).astype(dtype)

    params = dict(
        wte=nrm((V, C)),
        wpe=nrm((BS, C)),
        lnf_g=jnp.ones((1, C), jnp.float32),
        lnf_b=jnp.zeros((1, C), jnp.float32),
        # TODO(synk): reference query_encoder is Linear(n_embd, 256) but is applied
        # to (B, bridge_size) activations; sized to bridge_size so the bridge path runs.
        w_qenc=nrm((bridge_size, 256), jnp.float32),
        b_qenc=jnp.zeros((256,), jnp.float32),
        w_rdec=nrm((256, C), jnp.float32),
        b_rdec=jnp.zeros((C,), jnp.float32),
        w_lm=nrm((C, V)),                      # lm_head (no bias)
        blocks=[],
    )
    for _ in range(cfg["n_layer"]):
        blk = dict(
            ln1_g=jnp.ones((1, C), jnp.float32), ln1_b=jnp.zeros((1, C), jnp.float32),
            wqkv=nrm((C, 3 * C)), bqkv=jnp.zeros((3 * C,), jnp.float32),  # q|k|v fused
            wproj=nrm((C, C)), bproj=jnp.zeros((C,), jnp.float32),
            bridge_idx=jax.random.permutation(next(keys), C)[:bridge_size],
            wdet=nrm((bridge_size, 1), jnp.float32), bdet=jnp.zeros((1,), jnp.float32),
            ln2_g=jnp.ones((1, C), jnp.float32), ln2_b=jnp.zeros((1, C), jnp.float32),
            w1=nrm((C, 4 * C)), b1=jnp.zeros((4 * C,), jnp.float32),
            w2=nrm((4 * C, C)), b2=jnp.zeros((C,), jnp.float32),
        )
        params["blocks"].append(blk)
    return params


def block_forward(x, blk, cfg):
    B, T, C = x.shape
    x2d = x.reshape(B * T, C)

    # fused ln_1 + QKV projection (N-tiled), then flash attention per (batch, head)
    qkv = ln_qkv(x2d, blk["ln1_g"], blk["ln1_b"], blk["wqkv"], blk["bqkv"])
    attn = causal_attention(qkv.reshape(B, T, 3 * C), cfg["n_head"])      # (B, T, C)

    # fused: (attn @ wproj + bproj) + residual, then ln_2 + MLP + residual
    x_out2d, x_res2d = attn_epilogue_mlp(
        attn.reshape(B * T, C), x2d, blk["wproj"], blk["bproj"],
        blk["ln2_g"], blk["ln2_b"], blk["w1"], blk["b1"], blk["w2"], blk["b2"])

    # bridge detector on the projected attention output of the last token,
    # recovered from the residual stream (x_res - x == attn @ wproj + bproj).
    x_res = x_res2d.reshape(B, T, C)
    y_last = x_res[:, -1, :].astype(jnp.float32) - x[:, -1, :].astype(jnp.float32)
    bridge_acts = jnp.take(y_last, blk["bridge_idx"], axis=1)             # (B, bridge)
    bridge_signal = jax.nn.sigmoid(bridge_acts @ blk["wdet"] + blk["bdet"])
    bridge_activated = bridge_signal > cfg["bridge_activation_threshold"]
    return x_out2d.reshape(B, T, C), bridge_activated, bridge_acts


def forward(params, cfg, idx, external_response=None):
    B, T = idx.shape
    C = cfg["n_embd"]
    assert T <= cfg["block_size"]

    tok_emb = jnp.take(params["wte"], idx, axis=0)        # (B, T, C)
    pos_emb = params["wpe"][:T][None, :, :]               # (1, T, C)
    x = (tok_emb + pos_emb).astype(PARAM_DTYPE)           # dropout p=0 -> identity

    bridge_layers = (4, 8)                                 # matches reference model
    pending = []
    for i, blk in enumerate(params["blocks"]):
        x, bridge_activated, bridge_acts = block_forward(x, blk, cfg)
        if i in bridge_layers:
            # Compute the (tiny) query unconditionally so the data-dependent
            # check does not force a per-layer device->host sync.
            query = bridge_acts @ params["w_qenc"] + params["b_qenc"]      # (B, 256)
            pending.append((i, bridge_activated, query))

    # Single batched host sync for the data-dependent Python control flow.
    bridge_signals, bridge_queries = [], []
    if pending:
        flags = jax.device_get(jnp.stack([jnp.any(a) for (_, a, _) in pending]))
        for flag, (i, act, q) in zip(flags, pending):
            if bool(flag):
                bridge_signals.append((i, act))
                bridge_queries.append(q)

    x = layernorm(x.reshape(B * T, C), params["lnf_g"], params["lnf_b"]).reshape(B, T, C)

    if external_response is not None and len(bridge_queries) > 0:
        resp = external_response @ params["w_rdec"] + params["b_rdec"]     # (B, C)
        x = x.at[:, -1, :].add(resp.astype(x.dtype))

    logits = lm_head_matmul(x.reshape(B * T, C), params["w_lm"])
    logits = logits.reshape(B, T, -1)
    return logits, bridge_signals, bridge_queries


# ----------------------------------------------------------------------------
# Plain-JAX f32 reference (same bf16 weights) for a tolerance check
# ----------------------------------------------------------------------------

def reference_forward(params, cfg, idx):
    f32 = lambda a: a.astype(jnp.float32)
    B, T = idx.shape
    C = cfg["n_embd"]
    H = cfg["n_head"]
    hd = C // H

    def ln(v, g, b):
        mu = v.mean(-1, keepdims=True)
        var = ((v - mu) ** 2).mean(-1, keepdims=True)
        return (v - mu) * jax.lax.rsqrt(var + 1e-5) * f32(g) + f32(b)

    x = f32(jnp.take(params["wte"], idx, axis=0)) + f32(params["wpe"][:T])[None]
    mask = jnp.tril(jnp.ones((T, T), bool))
    for blk in params["blocks"]:
        h = ln(x, blk["ln1_g"], blk["ln1_b"])
        qkv = h @ f32(blk["wqkv"]) + f32(blk["bqkv"])
        q, k, v = jnp.split(qkv, 3, axis=-1)
        sp = lambda a: a.reshape(B, T, H, hd).transpose(0, 2, 1, 3)
        q, k, v = sp(q), sp(k), sp(v)
        att = (q @ k.transpose(0, 1, 3, 2)) / math.sqrt(hd)
        att = jnp.where(mask, att, -jnp.inf)
        att = jax.nn.softmax(att, axis=-1)
        y = (att @ v).transpose(0, 2, 1, 3).reshape(B, T, C)
        x = x + (y @ f32(blk["wproj"]) + f32(blk["bproj"]))
        m = jax.nn.gelu(ln(x, blk["ln2_g"], blk["ln2_b"]) @ f32(blk["w1"]) + f32(blk["b1"]),
                        approximate=False)
        x = x + (m @ f32(blk["w2"]) + f32(blk["b2"]))
    x = ln(x, params["lnf_g"], params["lnf_b"])
    return x @ f32(params["w_lm"])


# ----------------------------------------------------------------------------
# Demo
# ----------------------------------------------------------------------------

if __name__ == "__main__":
    cfg = dict(
        vocab_size=512,
        block_size=16,
        n_embd=512,
        n_head=4,              # head_dim = 128 -> no-transpose head BlockSpec path
        n_layer=6,             # layer index 4 hits the hard-coded bridge_layers=(4, 8)
        dropout=0.0,
        bridge_neurons_pct=0.25,           # bridge_size = 128
        bridge_activation_threshold=0.3,   # sigmoid(~0) ≈ 0.5 > 0.3 -> bridge path taken
    )

    key = jax.random.PRNGKey(0)
    pkey, dkey = jax.random.split(key)
    params = init_params(pkey, cfg)

    idx = jax.random.randint(dkey, (2, 8), 0, cfg["vocab_size"], dtype=jnp.int32)

    logits, bridge_signals, bridge_queries = forward(params, cfg, idx)
    jax.block_until_ready(logits)
    for _, act in bridge_signals:
        jax.block_until_ready(act)
    for q in bridge_queries:
        jax.block_until_ready(q)

    assert logits.shape == (2, 8, cfg["vocab_size"])
    assert bool(jnp.all(jnp.isfinite(logits)))

    # Tolerance check against the plain-JAX f32 reference (same bf16 weights);
    # differences come only from bf16 activation storage / accumulation order.
    ref = reference_forward(params, cfg, idx)
    max_err = float(jnp.max(jnp.abs(logits - ref)))
    assert max_err < 0.2, f"kernel/reference logits mismatch: max |diff| = {max_err}"

    # TODO(synk): generate()'s torch.multinomial sampling loop is host-side control
    # flow and is not ported; only the forward pass is implemented here.
    print("KERNEL_OK")
</pallas_src>

<mosaic_0001>
module attributes {stable_mosaic.version = 11 : i64} {
  func.func @_ln_qkv_kernel(%arg0: i32, %arg1: i32, %arg2: memref<16x512xbf16, #tpu.memory_space<vmem>>, %arg3: memref<1x512xf32, #tpu.memory_space<vmem>>, %arg4: memref<1x512xf32, #tpu.memory_space<vmem>>, %arg5: memref<512x768xbf16, #tpu.memory_space<vmem>>, %arg6: memref<1x768xf32, #tpu.memory_space<vmem>>, %arg7: memref<16x768xbf16, #tpu.memory_space<vmem>>, %arg8: memref<16x512xbf16, #tpu.memory_space<vmem>>) attributes {dimension_semantics = [#tpu.dimension_semantics<parallel>, #tpu.dimension_semantics<arbitrary>], iteration_bounds = array<i64: 1, 2>, scalar_prefetch = 0 : i64, scratch_operands = 1 : i64, tpu.core_type = #tpu.core_type<tc>, window_params = [{transform_indices = @transform_0, window_bounds = array<i64: 16, 512>}, {pipeline_mode = #tpu.pipeline_mode<synchronous>, transform_indices = @transform_1, window_bounds = array<i64: 1, 512>}, {pipeline_mode = #tpu.pipeline_mode<synchronous>, transform_indices = @transform_2, window_bounds = array<i64: 1, 512>}, {transform_indices = @transform_3, window_bounds = array<i64: 512, 768>}, {transform_indices = @transform_4, window_bounds = array<i64: 1, 768>}, {transform_indices = @transform_5, window_bounds = array<i64: 16, 768>}]} {
    %c0_i32 = arith.constant 0 : i32
    %0 = arith.cmpi eq, %arg1, %c0_i32 : i32
    %1 = arith.extui %0 : i1 to i32
    %c0_i32_0 = arith.constant 0 : i32
    %2 = arith.cmpi ne, %1, %c0_i32_0 : i32
    scf.if %2 {
      %c0_8 = arith.constant 0 : index
      %c0_9 = arith.constant 0 : index
      %11 = vector.load %arg2[%c0_8, %c0_9] : memref<16x512xbf16, #tpu.memory_space<vmem>>, vector<16x512xbf16>
      %12 = arith.extf %11 : vector<16x512xbf16> to vector<16x512xf32>
      %cst_10 = arith.constant dense<0.000000e+00> : vector<16xf32>
      %13 = vector.multi_reduction <add>, %12, %cst_10 [1] : vector<16x512xf32> to vector<16xf32>
      %14 = vector.shape_cast %13 : vector<16xf32> to vector<16x1xf32>
      %cst_11 = arith.constant 5.120000e+02 : f32
      %15 = vector.broadcast %cst_11 : f32 to vector<16x1xf32>
      %16 = arith.divf %14, %15 : vector<16x1xf32>
      %17 = vector.broadcast %16 : vector<16x1xf32> to vector<16x512xf32>
      %18 = arith.subf %12, %17 : vector<16x512xf32>
      %19 = vector.broadcast %16 : vector<16x1xf32> to vector<16x512xf32>
      %20 = arith.subf %12, %19 : vector<16x512xf32>
      %21 = arith.mulf %18, %20 : vector<16x512xf32>
      %cst_12 = arith.constant dense<0.000000e+00> : vector<16xf32>
      %22 = vector.multi_reduction <add>, %21, %cst_12 [1] : vector<16x512xf32> to vector<16xf32>
      %23 = vector.shape_cast %22 : vector<16xf32> to vector<16x1xf32>
      %cst_13 = arith.constant 5.120000e+02 : f32
      %24 = vector.broadcast %cst_13 : f32 to vector<16x1xf32>
      %25 = arith.divf %23, %24 : vector<16x1xf32>
      %26 = vector.broadcast %16 : vector<16x1xf32> to vector<16x512xf32>
      %27 = arith.subf %12, %26 : vector<16x512xf32>
      %cst_14 = arith.constant 9.99999974E-6 : f32
      %28 = vector.broadcast %cst_14 : f32 to vector<16x1xf32>
      %29 = arith.addf %25, %28 : vector<16x1xf32>
      %30 = math.rsqrt %29 : vector<16x1xf32>
      %31 = vector.broadcast %30 : vector<16x1xf32> to vector<16x512xf32>
      %32 = arith.mulf %27, %31 : vector<16x512xf32>
      %c0_15 = arith.constant 0 : index
      %c0_16 = arith.constant 0 : index
      %33 = vector.load %arg3[%c0_15, %c0_16] : memref<1x512xf32, #tpu.memory_space<vmem>>, vector<1x512xf32>
      %34 = vector.broadcast %33 : vector<1x512xf32> to vector<16x512xf32>
      %35 = arith.mulf %32, %34 : vector<16x512xf32>
      %c0_17 = arith.constant 0 : index
      %c0_18 = arith.constant 0 : index
      %36 = vector.load %arg4[%c0_17, %c0_18] : memref<1x512xf32, #tpu.memory_space<vmem>>, vector<1x512xf32>
      %37 = vector.broadcast %36 : vector<1x512xf32> to vector<16x512xf32>
      %38 = arith.addf %35, %37 : vector<16x512xf32>
      %39 = arith.truncf %38 : vector<16x512xf32> to vector<16x512xbf16>
      %c0_19 = arith.constant 0 : index
      %c0_20 = arith.constant 0 : index
      %40 = vector.load %arg8[%c0_19, %c0_20] : memref<16x512xbf16, #tpu.memory_space<vmem>>, vector<16x512xbf16>
      tpu.vector_store %arg8[%c0_19, %c0_20], %39 {strides = array<i32>} : memref<16x512xbf16, #tpu.memory_space<vmem>>, vector<16x512xbf16>,
    } else {
    }
    %c0 = arith.constant 0 : index
    %c0_1 = arith.constant 0 : index
    %3 = vector.load %arg8[%c0, %c0_1] : memref<16x512xbf16, #tpu.memory_space<vmem>>, vector<16x512xbf16>
    %c0_2 = arith.constant 0 : index
    %c0_3 = arith.constant 0 : index
    %4 = vector.load %arg5[%c0_2, %c0_3] : memref<512x768xbf16, #tpu.memory_space<vmem>>, vector<512x768xbf16>
    %cst = arith.constant dense<0.000000e+00> : vector<16x768xf32>
    %5 = tpu.matmul %3, %4, %cst {dimension_numbers = #tpu.dot_dimension_numbers<[1], [0], [0], [1], [0, 0, 1, 1], [], []>} : vector<16x512xbf16>, vector<512x768xbf16>, vector<16x768xf32> -> vector<16x768xf32>
    %c0_4 = arith.constant 0 : index
    %c0_5 = arith.constant 0 : index
    %6 = vector.load %arg6[%c0_4, %c0_5] : memref<1x768xf32, #tpu.memory_space<vmem>>, vector<1x768xf32>
    %7 = vector.broadcast %6 : vector<1x768xf32> to vector<16x768xf32>
    %8 = arith.addf %5, %7 : vector<16x768xf32>
    %9 = arith.truncf %8 : vector<16x768xf32> to vector<16x768xbf16>
    %c0_6 = arith.constant 0 : index
    %c0_7 = arith.constant 0 : index
    %10 = vector.load %arg7[%c0_6, %c0_7] : memref<16x768xbf16, #tpu.memory_space<vmem>>, vector<16x768xbf16>
    tpu.vector_store %arg7[%c0_6, %c0_7], %9 {strides = array<i32>} : memref<16x768xbf16, #tpu.memory_space<vmem>>, vector<16x768xbf16>,
    return
  }
  func.func @transform_0(%arg0: i32, %arg1: i32) -> (i32, i32) {
    %c0_i32 = arith.constant 0 : i32
    %c0_i32_0 = arith.constant 0 : i32
    return %arg0, %c0_i32 : i32, i32
  }
  func.func @transform_1(%arg0: i32, %arg1: i32) -> (i32, i32) {
    %c0_i32 = arith.constant 0 : i32
    %c0_i32_0 = arith.constant 0 : i32
    %c0_i32_1 = arith.constant 0 : i32
    return %c0_i32, %c0_i32_0 : i32, i32
  }
  func.func @transform_2(%arg0: i32, %arg1: i32) -> (i32, i32) {
    %c0_i32 = arith.constant 0 : i32
    %c0_i32_0 = arith.constant 0 : i32
    %c0_i32_1 = arith.constant 0 : i32
    return %c0_i32, %c0_i32_0 : i32, i32
  }
  func.func @transform_3(%arg0: i32, %arg1: i32) -> (i32, i32) {
    %c0_i32 = arith.constant 0 : i32
    %c0_i32_0 = arith.constant 0 : i32
    return %c0_i32, %arg1 : i32, i32
  }
  func.func @transform_4(%arg0: i32, %arg1: i32) -> (i32, i32) {
    %c0_i32 = arith.constant 0 : i32
    %c0_i32_0 = arith.constant 0 : i32
    return %c0_i32, %arg1 : i32, i32
  }
  func.func @transform_5(%arg0: i32, %arg1: i32) -> (i32, i32) {
    %c0_i32 = arith.constant 0 : i32
    return %arg0, %arg1 : i32, i32
  }
}

</mosaic_0001>

<bundles_post_ra>
// kernel: tpu_custom_call.1
= control target key start
LH: loop header
LB: loop body
LE: loop exit
PB: predicated region body
PF: predicated region fallthrough
CT: control target
= control target key end

     0   :  { %s3528_s0 = inlined_call_operand.hbm [shape: bf16[16,512], index: 0, kind: input, shape index: {}]   ;;  %s3529_s1 = inlined_call_operand.hbm [shape: f32[1,512], index: 1, kind: input, shape index: {}]   ;;  %s3530_s2 = inlined_call_operand.hbm [shape: f32[1,512], index: 2, kind: input, shape index: {}]   ;;  %s3531_s3 = inlined_call_operand.hbm [shape: bf16[512,1536], index: 3, kind: input, shape index: {}]   ;;  %s3532_s4 = inlined_call_operand.hbm [shape: f32[1,1536], index: 4, kind: input, shape index: {}]   ;;  %s3533_s5 = inlined_call_operand.hbm [shape: bf16[16,1536], index: 5, kind: output, shape index: {}]  }
   0x1   :  { %3540 = sst [smem:[#allocation19_spill]] %s3528_s0 }
   0x2   :  { %3541 = sst [smem:[#allocation20_spill]] %s3529_s1 }
   0x3   :  { %10 = vsyncpa [#allocation4], 0 }
   0x4   :  { %11 = vsyncpa [#allocation7], 0 }
   0x5   :  { %12 = vsyncpa [#allocation10], 0 }
   0x6   :  { %14 = vsyncpa [#allocation10 + $0x1], 0 }
   0x7   :  { %15 = vsyncpa [#allocation5], 0 }
   0x8   :  { %17 = vsyncpa [#allocation5 + $0x1], 0  ;;  %s3078_s18 = smov 0   ;;  %s3080_s19 = smov 0  }
   0x9   :  { %s3082_s20 = smov 0   ;;  %s3084_s21 = smov 0  }
   0xa   :  { %s3086_s22 = smov 0   ;;  %s3088_s23 = smov 0  }
   0xb LB: > { %3542 = sst [smem:[#allocation17_spill]] %s3032_s23  ;;  %s3109_s24 = sadd.s32 4294967295, %s3032_s23   ;;  %s3032_s23 = sphi %s3088_s23, %s23_s23   ;;  %s3028_s22 = sphi %s3086_s22, %s3567_s22   ;;  %s3024_s21 = sphi %s3084_s21, %s3566_s21   ;;  %s3020_s20 = sphi %s3082_s20, %s3565_s20   ;;  %s3016_s19 = sphi %s3080_s19, %s3564_s19   ;;  %s3012_s18 = sphi %s3078_s18, %s3563_s18  }
   0xc   : > { %s2166_s25 = sadd.s32 4294967294, %s3032_s23   ;;  %s110_s26 = sadd.s32 1, %s3020_s20 }
   0xd   : > { %p117_p0 = scmp.ne.s32.totalorder %s3020_s20, %s3016_s19  ;;  %p118_p1 = scmp.eq.s32.totalorder %s3032_s23, 0 }
   0xe   : > { %p123_p2 = scmp.ne.s32.totalorder %s3016_s19, %s3012_s18  ;;  %p3539_p3 = scmp.eq.s32.totalorder %s3109_s24, 0 }
   0xf   : > { %p175_p4 = scmp.eq.s32.totalorder %s3109_s24, 1  ;;  %p3120_p5 = por %p118_p1, %p117_p0 }
  0x10   : > { %p181_p6 = scmp.eq.s32.totalorder %s2166_s25, 1  ;;  %p3126_p7 = por %p3539_p3, %p123_p2 }
  0x11   : > { %p3130_p8 = por %p175_p4, %p117_p0  ;;  %p2167_p10 = scmp.ge.s32.totalorder %s3032_s23, 1 }
  0x12   : > { %p3134_p9 = por %p181_p6, %p123_p2  ;;  %p188_p11 = scmp.lt.s32.totalorder %s3032_s23, 3 }
  0x13   : > { %s3545_s29 = scalar_select %p3130_p8, 1, 0 }
  0x14   : > { %s3546_s30 = scalar_select %p3134_p9, 1, 0 }
  0x15   : > { %p3141_p13 = pnand %p2167_p10, %p188_p11  ;;  %s3034_s7 = smov [#allocation6]  }
  0x16   : > { %3547 = sst [smem:[#allocation18_spill]] %s3546_s30  ;;  %s218_s8 = sshll.u32 %s3034_s7, 4  ;;  %s219_s8 = int_to_ptr.vmem [resolvable:$true] %s218_s8 }
  0x17   : > { %p2448_p1 = scmp.lt.s32.totalorder %s3032_s23, 2  ;;  %p2424_p0 = pneg %p3141_p13 }
  0x18   : > { %s32_s11 = sadd.s32 1, %s3028_s22  ;;  %s240_s12 = sand.u32 1, %s3032_s23  }
  0x19   : > { %p3150_p4 = pnand %p2448_p1, %p3120_p5  ;;  %p3156_p2 = pnand %p2424_p0, %p3539_p3 }
  0x1a   : > { %p33_p6 = scmp.ge.s32.totalorder %s32_s11, 2  ;;  %s2821_s13 = scalar_lea.vmem %s219_s8, 64 }
  0x1b   : > { %p2812_p10 = pneg %p3156_p2  ;;  %p2822_p11 = scmp.ne.s32.totalorder %s219_s8, %s2821_s13 }
  0x1c   : > { %p2829_p12 = scmp.lt.s32.totalorder %s219_s8, %s219_s8  ;;  %p2830_p9 = scmp.lt.s32.totalorder %s2821_s13, %s2821_s13 }
  0x1d   : > { %p2824_p5 = pnand %p2822_p11, %p2812_p10 }
  0x1e   : > { %p2831_p8 = por %p2830_p9, %p2829_p12 }
  0x1f   : > { %p2825_p1 = pneg %p2824_p5 }
  0x21   : > { %p2832_p0 = pnand %p2831_p8, %p2825_p1 }
  0x23   : > { %2835 = shalt.err (!%p2832_p0)
}
  0x24   : > { %s3551_s1 = sld [smem:[#allocation20_spill]]  ;;  %s3569_s11 = smov (%p33_p6, %s32_s11), 0 }
  0x25   : > { %s3538_s16 = sand.u32 1, %s3020_s20   ;;  %s107_s17 = ssub.s32 %s3028_s22, %s3569_s11 }
  0x26   : > { %s2401_s25 = smul.u32 1536, %s3538_s16  ;;  %p108_p8 = scmp.eq.s32.totalorder %s107_s17, 0 }
  0x27   : > { %s2388_s27 = smul.u32 384, %s3028_s22  ;;  %p2838_p9 = pneg %p3150_p4 }
  0x28   : > { %s3183_s7 = scalar_select %p108_p8, %s3020_s20, %s110_s26  }
  0x29   : > { %s250_s15 = scalar_lea.hbm %s3531_s3, %s2388_s27  ;;  %s244_s23 = scalar_lea.vmem [#allocation9], %s2401_s25 }
  0x2a   : > { %2430 = dma.hbm_to_vmem [thread:$0]  (!%p3156_p2), %s3551_s1, 64, %s219_s8, [#allocation7]  }
  0x2b   : > { %s251_s30 = sshll.u32 %s244_s23, 4  ;;  %s3188_s8 = scalar_lea.sflag [#allocation10], %s240_s12  ;;  %s252_s30 = int_to_ptr.vmem [resolvable:$true] %s251_s30 }
  0x2c   : > { %s2849_s1 = scalar_lea.vmem %s252_s30, 24576  ;;  %s3035_s17 = smov [#allocation9]  }
  0x2d   : > { %p2850_p12 = scmp.ne.s32.totalorder %s252_s30, %s2849_s1  ;;  %s2854_s26 = sshll.u32 %s3035_s17, 4  ;;  %s2855_s26 = int_to_ptr.vmem [resolvable:$false] %s2854_s26 }
  0x2e   : > { %s2856_s16 = scalar_lea.vmem %s2855_s26, 49152  ;;  %p2857_p5 = scmp.lt.s32.totalorder %s252_s30, %s2855_s26 }
  0x2f   : > { %p2852_p6 = pnand %p2850_p12, %p2838_p9  ;;  %p2858_p1 = scmp.lt.s32.totalorder %s2856_s16, %s2849_s1 }
  0x31   : > { %p2853_p11 = pneg %p2852_p6  ;;  %p2859_p0 = por %p2858_p1, %p2857_p5 }
  0x33   : > { %p2860_p8 = pnand %p2859_p0, %p2853_p11 }
  0x35   : > { %2863 = shalt.err (!%p2860_p8)
}
  0x36   : > { %s3036_s23 = smov 768   ;;  %s3037_s12 = smov 384  }
  0x37   : > { %s3038_s25 = smov 24   ;;  %s3039_s27 = smov [#allocation3]  }
  0x38   : > { %2437 = dma.hbm_to_vmem [thread:$0]  (!%p3150_p4), %s250_s15, 24576, %s252_s30, %s3188_s8, %s3036_s23, %s3037_s12, %s3038_s25  }
  0x39   : > { %s204_s13 = sshll.u32 %s3039_s27, 4  ;;  %s205_s13 = int_to_ptr.vmem [resolvable:$true] %s204_s13 }
  0x3a   : > { %s2875_s14 = scalar_lea.vmem %s205_s13, 512  ;;  %p2883_p5 = scmp.lt.s32.totalorder %s205_s13, %s205_s13 }
  0x3b   : > { %p2876_p12 = scmp.ne.s32.totalorder %s205_s13, %s2875_s14  ;;  %p2884_p11 = scmp.lt.s32.totalorder %s2875_s14, %s2875_s14 }
  0x3d   : > { %p2878_p6 = pnand %p2876_p12, %p2812_p10  ;;  %p2885_p1 = por %p2884_p11, %p2883_p5 }
  0x3f   : > { %p2879_p3 = pneg %p2878_p6 }
  0x41   : > { %p2886_p0 = pnand %p2885_p1, %p2879_p3 }
  0x43   : > { %2889 = shalt.err (!%p2886_p0)
}
  0x44   : > { %s3040_s1 = smov 256   ;;  %s3041_s30 = smov 16  }
  0x45   : > { %s3552_s0 = sld [smem:[#allocation19_spill]]  ;;  %s3553_s17 = sand.u32 1, %s3020_s20  }
  0x46   : > { %s2402_s26 = smul.u32 6, %s3553_s17  ;;  %s3042_s23 = smov [#allocation8]  }
  0x47   : > { %s229_s12 = sshll.u32 %s3042_s23, 4  ;;  %s2389_s25 = smul.u32 96, %s3028_s22  ;;  %s230_s12 = int_to_ptr.vmem [resolvable:$true] %s229_s12 }
  0x48   : > { %s2901_s27 = scalar_lea.vmem %s230_s12, 64  ;;  %p2909_p6 = scmp.lt.s32.totalorder %s230_s12, %s230_s12 }
  0x49   : > { %p2902_p3 = scmp.ne.s32.totalorder %s230_s12, %s2901_s27  ;;  %p2910_p5 = scmp.lt.s32.totalorder %s2901_s27, %s2901_s27 }
  0x4b   : > { %2427 = dma.hbm_to_vmem [thread:$0]  (!%p3156_p2), %s3552_s0, 512, %s205_s13, [#allocation4], %s3040_s1, %s3040_s1, %s3041_s30  }
  0x4c   : > { %p2904_p8 = pnand %p2902_p3, %p2812_p10  ;;  %p2911_p11 = por %p2910_p5, %p2909_p6 }
  0x4e   : > { %p2905_p12 = pneg %p2904_p8 }
  0x50   : > { %p2912_p1 = pnand %p2911_p11, %p2905_p12 }
  0x52   : > { %2915 = shalt.err (!%p2912_p1)
}
  0x53   : > { %2433 = dma.hbm_to_vmem [thread:$0]  (!%p3156_p2), %s3530_s2, 64, %s230_s12, [#allocation7]  }
  0x54   : > { %s271_s16 = scalar_lea.hbm %s3532_s4, %s2389_s25  ;;  %s265_s15 = scalar_lea.vmem [#allocation11], %s2402_s26 }
  0x55   : > { %s273_s17 = sshll.u32 %s265_s15, 4  ;;  %s3043_s27 = smov [#allocation11]   ;;  %s274_s17 = int_to_ptr.vmem [resolvable:$true] %s273_s17 }
  0x56   : > { %s2929_s23 = scalar_lea.vmem %s274_s17, 96  ;;  %s2934_s10 = sshll.u32 %s3043_s27, 4  ;;  %s2935_s10 = int_to_ptr.vmem [resolvable:$false] %s2934_s10 }
  0x57   : > { %p2930_p10 = scmp.ne.s32.totalorder %s274_s17, %s2929_s23  ;;  %s2936_s0 = scalar_lea.vmem %s2935_s10, 192 }
  0x58   : > { %p2937_p8 = scmp.lt.s32.totalorder %s274_s17, %s2935_s10  ;;  %p2938_p12 = scmp.lt.s32.totalorder %s2936_s0, %s2929_s23 }
  0x59   : > { %p2932_p0 = pnand %p2930_p10, %p2838_p9 }
  0x5a   : > { %p2939_p2 = por %p2938_p12, %p2937_p8 }
  0x5b   : > { %p2933_p3 = pneg %p2932_p0 }
  0x5d   : > { %p2940_p6 = pnand %p2939_p2, %p2933_p3 }
  0x5f   : > { %2943 = shalt.err (!%p2940_p6)
}
  0x60   : > { %2440 = dma.hbm_to_vmem [thread:$0]  (!%p3150_p4), %s271_s16, 96, %s274_s17, %s3188_s8  }
  0x61   : > { %282 = sbr.rel (%p3141_p13) target bundleno = 860 (0x35c), region = 40  ;;  %p3554_p5 = scmp.eq.s32.totalorder (!%p3141_p13), %s3109_s24, 0 }
  0x66   : > { %2995 = dma.done.wait (%p3554_p5), [#allocation4], 512   ;;  %p3555_p9 = pmov %p3554_p5 }
  0x67   : > { %p3556_p11 = pmov %p3554_p5 }
  0x68   : > { %2997 = vsyncadd (%p3555_p9), [#allocation4], 4294966784 }
  0x69   : > { %2999 = dma.done.wait (%p3556_p11), [#allocation7], 128   ;;  %p3557_p1 = pmov %p3554_p5 }
  0x6a   : > { %s296_s0 = sand.u32 1, %s3109_s24   ;;  %s3238_s9 = sand.u32 1, %s3016_s19  }
  0x6b   : > { %3001 = vsyncadd (%p3557_p1), [#allocation7], 4294967168  ;;  %s2403_s6 = smul.u32 1536, %s3238_s9  ;;  %s297_s8 = scalar_lea.sflag [#allocation10], %s296_s0 }
  0x6d   : > { %s3241_s26 = scalar_lea.vmem [#allocation9], %s2403_s6 }
  0x6e   : > { %3003 = dma.done.wait (%p3126_p7), %s297_s8, 24672  }
  0x6f   : > { %3005 = vsyncadd (%p3126_p7), %s297_s8, 4294942624  ;;  %s2404_s12 = smul.u32 6, %s3238_s9  ;;  %p2178_p13 = scmp.ne.s32.totalorder %s3024_s21, 0 }
  0x70   : > { %s2405_s25 = smul.u32 48, %s3238_s9 }
  0x71   : > { %s3249_s13 = scalar_lea.vmem [#allocation11], %s2404_s12  ;;  %349 = sbr.rel (%p2178_p13) target bundleno = 447 (0x1bf), region = 64 }
  0x72   : > { %s3251_s14 = scalar_lea.vmem [#allocation12], %s2405_s25 }
  0x76   : > { %v350_v0 = vld [vmem:[#allocation3] sm:$0xff]  ;;  %v351_v1 = vld [vmem:[#allocation3 + $0x8] sm:$0xff]  ;;  %v352_v2 = vld [vmem:[#allocation3 + $0x10] sm:$0xff]  ;;  %v417_v48 = vlaneseq }
  0x77   : > { %v354_v3 = vunpack.c.l.bf16 %v350_v0  ;;  %v355_v4 = vunpack.c.h.bf16 %v350_v0  ;;  %v356_v5 = vunpack.c.l.bf16 %v351_v1  ;;  %v353_v6 = vld [vmem:[#allocation3 + $0x18] sm:$0xff]  ;;  %v358_v7 = vunpack.c.l.bf16 %v352_v2  ;;  %v415_v56 = vld [vmem:[#allocation6] sm:$0xf]  ;;  %v445_v57 = vld [vmem:[#allocation8] sm:$0xf] }
  0x78   : > { %v359_v8 = vunpack.c.h.bf16 %v352_v2  ;;  %v360_v9 = vunpack.c.l.bf16 %v353_v6  ;;  %v357_v10 = vunpack.c.h.bf16 %v351_v1  ;;  %v361_v14 = vunpack.c.h.bf16 %v353_v6 }
  0x79   : > { %v362_v11 = vadd.f32 %v355_v4, %v354_v3  ;;  %v418_v51 = vshrl.u32 %v417_v48, 7 }
  0x7a   : > { %v367_v12 = vadd.f32 %v359_v8, %v358_v7 }
  0x7b   : > { %v363_v13 = vadd.f32 %v362_v11, %v356_v5  ;;  %v419_v52 = vsub.s32 0, %v418_v51  ;;  %v423_v53 = vsub.s32 1, %v418_v51  ;;  %v427_v54 = vsub.s32 2, %v418_v51 }
  0x7c   : > { %v368_v15 = vadd.f32 %v367_v12, %v360_v9  ;;  %v431_v55 = vsub.s32 3, %v418_v51 }
  0x7d   : > { %v364_v16 = vadd.f32 %v363_v13, %v357_v10  ;;  %v420_v58 = vrot.slane %v415_v56, %v419_v52  ;;  %v424_v59 = vrot.slane %v415_v56, %v423_v53  ;;  %v428_v60 = vrot.slane %v415_v56, %v427_v54 }
  0x7e   : > { %v369_v17 = vadd.f32 %v368_v15, %v361_v14  ;;  %v432_v61 = vrot.slane %v415_v56, %v431_v55  ;;  %v450_v63 = vrot.slane %v445_v57, %v419_v52  ;;  %v454_v0 = vrot.slane %v445_v57, %v423_v53 }
  0x7f   : > { %365 = vadd.xlane.f32.xlu0 %v364_v16  ;;  %v458_v1 = vrot.slane %v445_v57, %v427_v54  ;;  %v462_v2 = vrot.slane %v445_v57, %v431_v55 }
  0x83   : > { %370 = vadd.xlane.f32.xlu0 %v369_v17 }
 0x108   : > { %v366_v18 = vpop.xlane.xlu0 %365 }
 0x109   : > { %v373_v19 = vmul.f32 0.001953125, %v366_v18 }
 0x10b   : > { %v375_v20 = vsub.f32 %v354_v3, %v373_v19  ;;  %v376_v21 = vsub.f32 %v355_v4, %v373_v19  ;;  %v377_v22 = vsub.f32 %v356_v5, %v373_v19  ;;  %v378_v24 = vsub.f32 %v357_v10, %v373_v19 }
 0x10c   : > { %v371_v23 = vpop.xlane.xlu0 %370 }
 0x10d   : > { %v374_v25 = vmul.f32 0.001953125, %v371_v23  ;;  %v383_v26 = vmul.f32 %v375_v20, %v375_v20  ;;  %v384_v27 = vmul.f32 %v376_v21, %v376_v21  ;;  %v385_v28 = vmul.f32 %v377_v22, %v377_v22 }
 0x10e   : > { %v386_v33 = vmul.f32 %v378_v24, %v378_v24 }
 0x10f   : > { %v379_v29 = vsub.f32 %v358_v7, %v374_v25  ;;  %v380_v30 = vsub.f32 %v359_v8, %v374_v25  ;;  %v391_v31 = vadd.f32 %v384_v27, %v383_v26  ;;  %v381_v32 = vsub.f32 %v360_v9, %v374_v25 }
 0x110   : > { %v382_v35 = vsub.f32 %v361_v14, %v374_v25 }
 0x111   : > { %v392_v34 = vadd.f32 %v391_v31, %v385_v28  ;;  %v387_v36 = vmul.f32 %v379_v29, %v379_v29  ;;  %v388_v37 = vmul.f32 %v380_v30, %v380_v30  ;;  %v389_v39 = vmul.f32 %v381_v32, %v381_v32 }
 0x112   : > { %v390_v41 = vmul.f32 %v382_v35, %v382_v35 }
 0x113   : > { %v393_v38 = vadd.f32 %v392_v34, %v386_v33  ;;  %v396_v40 = vadd.f32 %v388_v37, %v387_v36 }
 0x115   : > { %394 = vadd.xlane.f32.xlu1 %v393_v38  ;;  %v397_v42 = vadd.f32 %v396_v40, %v389_v39 }
 0x117   : > { %v398_v43 = vadd.f32 %v397_v42, %v390_v41 }
 0x119   : > { %399 = vadd.xlane.f32.xlu1 %v398_v43 }
 0x19e   : > { %v395_v44 = vpop.xlane.xlu1 %394 }
 0x19f   : > { %v401_v45 = vmul.f32 0.001953125, %v395_v44 }
 0x1a1   : > { %v403_v46 = vadd.f32 1e-05, %v401_v45 }
 0x1a2   : > { %v400_v47 = vpop.xlane.xlu1 %399 }
 0x1a3   : > { %2512 = vrsqrt.f32 %v403_v46  ;;  %v402_v49 = vmul.f32 0.001953125, %v400_v47 }
 0x1a5   : > { %v404_v50 = vadd.f32 1e-05, %v402_v49 }
 0x1a7   : > { %2514 = vrsqrt.f32 %v404_v50 }
 0x1b0   : > { %v2513_v62 = vpop.eup %2512 }
 0x1b1   : > { %v407_v3 = vmul.f32 %v2513_v62, %v375_v20  ;;  %v408_v4 = vmul.f32 %v2513_v62, %v376_v21  ;;  %v409_v5 = vmul.f32 %v2513_v62, %v377_v22  ;;  %v410_v6 = vmul.f32 %v2513_v62, %v378_v24 }
 0x1b3   : > { %v437_v7 = vmul.f32 %v420_v58, %v407_v3  ;;  %v438_v8 = vmul.f32 %v424_v59, %v408_v4  ;;  %v439_v9 = vmul.f32 %v428_v60, %v409_v5  ;;  %v440_v10 = vmul.f32 %v432_v61, %v410_v6 }
 0x1b4   : > { %v2515_v11 = vpop.eup %2514 }
 0x1b5   : > { %v467_v12 = vadd.f32 %v450_v63, %v437_v7  ;;  %v468_v13 = vadd.f32 %v454_v0, %v438_v8  ;;  %v469_v14 = vadd.f32 %v458_v1, %v439_v9  ;;  %v470_v15 = vadd.f32 %v462_v2, %v440_v10 }
 0x1b6   : > { %v411_v16 = vmul.f32 %v2515_v11, %v379_v29  ;;  %v412_v17 = vmul.f32 %v2515_v11, %v380_v30  ;;  %v413_v18 = vmul.f32 %v2515_v11, %v381_v32  ;;  %v414_v19 = vmul.f32 %v2515_v11, %v382_v35 }
 0x1b7   : > { %v2390_v23 = vpack.c.bf16 %v468_v13, %v467_v12  ;;  %v2391_v25 = vpack.c.bf16 %v470_v15, %v469_v14 }
 0x1b8   : > { %v441_v26 = vmul.f32 %v420_v58, %v411_v16  ;;  %v442_v20 = vmul.f32 %v424_v59, %v412_v17  ;;  %v443_v21 = vmul.f32 %v428_v60, %v413_v18  ;;  %v444_v22 = vmul.f32 %v432_v61, %v414_v19 }
 0x1b9   : > { %499 = vst [vmem:[#allocation2 + $0x10] sm:$0xff] %v2390_v23  ;;  %500 = vst [vmem:[#allocation2] sm:$0xff] %v2391_v25 }
 0x1ba   : > { %v471_v24 = vadd.f32 %v450_v63, %v441_v26  ;;  %v472_v27 = vadd.f32 %v454_v0, %v442_v20  ;;  %v473_v28 = vadd.f32 %v458_v1, %v443_v21  ;;  %v474_v31 = vadd.f32 %v462_v2, %v444_v22 }
 0x1bc   : > { %v2392_v33 = vpack.c.bf16 %v472_v27, %v471_v24  ;;  %v2393_v34 = vpack.c.bf16 %v474_v31, %v473_v28 }
 0x1be   : > { %501 = vst [vmem:[#allocation2 + $0x18] sm:$0xff] %v2392_v33  ;;  %502 = vst [vmem:[#allocation2 + $0x8] sm:$0xff] %v2393_v34 }
 0x1bf PF: > { %v2516_v29 = vld [vmem:[%s3241_s26 + $0x154] ss:$24 sps:$4 sm:$0xff]   ;;  %v2520_v32 = vld [vmem:[%s3241_s26 + $0x150] ss:$24 sps:$4 sm:$0xff]   ;;  %v2522_v36 = vld [vmem:[%s3241_s26 + $0x124] ss:$24 sps:$4 sm:$0xff]  }
 0x1c0   : > { %v2518_v30 = vld [vmem:[%s3241_s26 + $0x454] ss:$24 sps:$4 sm:$0xff]   ;;  %1711 = vmatprep.subr.bf16.mxu0 %v2516_v29  ;;  %v2521_v35 = vld [vmem:[%s3241_s26 + $0x450] ss:$24 sps:$4 sm:$0xff]   ;;  %v2524_v37 = vld [vmem:[%s3241_s26 + $0x424] ss:$24 sps:$4 sm:$0xff]  }
 0x1c1   : > { %1754 = vmatprep.subr.bf16.mxu1 %v2518_v30  ;;  %1712 = vmatpush1.bf16.msra.mxu0 %v2520_v32  ;;  %v2526_v38 = vld [vmem:[%s3241_s26 + $0x120] ss:$24 sps:$4 sm:$0xff]   ;;  %v2528_v40 = vld [vmem:[%s3241_s26 + $0xf4] ss:$24 sps:$4 sm:$0xff]   ;;  %v2532_v42 = vld [vmem:[%s3241_s26 + $0xf0] ss:$24 sps:$4 sm:$0xff]  }
 0x1c2   : > { %1755 = vmatpush1.bf16.msra.mxu1 %v2521_v35  ;;  %1713 = vmatprep.subr.bf16.mxu0 %v2522_v36  ;;  %v2527_v39 = vld [vmem:[%s3241_s26 + $0x420] ss:$24 sps:$4 sm:$0xff]   ;;  %v2530_v41 = vld [vmem:[%s3241_s26 + $0x3f4] ss:$24 sps:$4 sm:$0xff]   ;;  %v2533_v43 = vld [vmem:[%s3241_s26 + $0x3f0] ss:$24 sps:$4 sm:$0xff]  }
 0x1c3   : > { %1756 = vmatprep.subr.bf16.mxu1 %v2524_v37  ;;  %v2534_v44 = vld [vmem:[%s3241_s26 + $0xc4] ss:$24 sps:$4 sm:$0xff]   ;;  %v2538_v46 = vld [vmem:[%s3241_s26 + $0xc0] ss:$24 sps:$4 sm:$0xff]   ;;  %v2540_v48 = vld [vmem:[%s3241_s26 + $0x94] ss:$24 sps:$4 sm:$0xff]  }
 0x1c4   : > { %v2536_v45 = vld [vmem:[%s3241_s26 + $0x3c4] ss:$24 sps:$4 sm:$0xff]   ;;  %v2539_v47 = vld [vmem:[%s3241_s26 + $0x3c0] ss:$24 sps:$4 sm:$0xff]   ;;  %v2542_v49 = vld [vmem:[%s3241_s26 + $0x394] ss:$24 sps:$4 sm:$0xff]  }
 0x1c5   : > { %1714 = vmatpush1.bf16.msra.mxu0 %v2526_v38  ;;  %v2544_v50 = vld [vmem:[%s3241_s26 + $0x90] ss:$24 sps:$4 sm:$0xff]   ;;  %v2546_v52 = vld [vmem:[%s3241_s26 + $0x64] ss:$24 sps:$4 sm:$0xff]   ;;  %v2550_v54 = vld [vmem:[%s3241_s26 + $0x60] ss:$24 sps:$4 sm:$0xff]  }
 0x1c6   : > { %1757 = vmatpush1.bf16.msra.mxu1 %v2527_v39  ;;  %1715 = vmatprep.subr.bf16.mxu0 %v2528_v40  ;;  %v2545_v51 = vld [vmem:[%s3241_s26 + $0x390] ss:$24 sps:$4 sm:$0xff]   ;;  %v2548_v53 = vld [vmem:[%s3241_s26 + $0x364] ss:$24 sps:$4 sm:$0xff]   ;;  %v2551_v55 = vld [vmem:[%s3241_s26 + $0x360] ss:$24 sps:$4 sm:$0xff]  }
 0x1c7   : > { %1758 = vmatprep.subr.bf16.mxu1 %v2530_v41  ;;  %v2552_v56 = vld [vmem:[%s3241_s26 + $0x34] ss:$24 sps:$4 sm:$0xff]   ;;  %v2556_v58 = vld [vmem:[%s3241_s26 + $0x30] ss:$24 sps:$4 sm:$0xff]   ;;  %v2558_v60 = vld [vmem:[%s3241_s26 + $0x4] ss:$24 sps:$4 sm:$0xff]  }
 0x1c8   : > { %v2554_v57 = vld [vmem:[%s3241_s26 + $0x334] ss:$24 sps:$4 sm:$0xff]   ;;  %v2557_v59 = vld [vmem:[%s3241_s26 + $0x330] ss:$24 sps:$4 sm:$0xff]   ;;  %v2560_v61 = vld [vmem:[%s3241_s26 + $0x304] ss:$24 sps:$4 sm:$0xff]  }
 0x1c9   : > { %1716 = vmatpush1.bf16.msra.mxu0 %v2532_v42  ;;  %v2562_v62 = vld [vmem:[%s3241_s26] ss:$24 sps:$4 sm:$0xff]   ;;  %v2564_v0 = vld [vmem:[%s3241_s26 + $0x2d4] ss:$24 sps:$4 sm:$0xff]   ;;  %v2568_v2 = vld [vmem:[%s3241_s26 + $0x2d0] ss:$24 sps:$4 sm:$0xff]  }
 0x1ca   : > { %1759 = vmatpush1.bf16.msra.mxu1 %v2533_v43  ;;  %1717 = vmatprep.subr.bf16.mxu0 %v2534_v44  ;;  %v2563_v63 = vld [vmem:[%s3241_s26 + $0x300] ss:$24 sps:$4 sm:$0xff]   ;;  %v2566_v1 = vld [vmem:[%s3241_s26 + $0x5d4] ss:$24 sps:$4 sm:$0xff]   ;;  %v2569_v3 = vld [vmem:[%s3241_s26 + $0x5d0] ss:$24 sps:$4 sm:$0xff]  }
 0x1cb   : > { %1760 = vmatprep.subr.bf16.mxu1 %v2536_v45  ;;  %v2570_v4 = vld [vmem:[%s3241_s26 + $0x2a4] ss:$24 sps:$4 sm:$0xff]   ;;  %v2574_v6 = vld [vmem:[%s3241_s26 + $0x2a0] ss:$24 sps:$4 sm:$0xff]   ;;  %v2576_v8 = vld [vmem:[%s3241_s26 + $0x274] ss:$24 sps:$4 sm:$0xff]  }
 0x1cc   : > { %v2572_v5 = vld [vmem:[%s3241_s26 + $0x5a4] ss:$24 sps:$4 sm:$0xff]   ;;  %v2575_v7 = vld [vmem:[%s3241_s26 + $0x5a0] ss:$24 sps:$4 sm:$0xff]   ;;  %v2578_v9 = vld [vmem:[%s3241_s26 + $0x574] ss:$24 sps:$4 sm:$0xff]  }
 0x1cd   : > { %1718 = vmatpush1.bf16.msra.mxu0 %v2538_v46  ;;  %v2580_v10 = vld [vmem:[%s3241_s26 + $0x270] ss:$24 sps:$4 sm:$0xff]   ;;  %v2582_v12 = vld [vmem:[%s3241_s26 + $0x244] ss:$24 sps:$4 sm:$0xff]   ;;  %v2586_v14 = vld [vmem:[%s3241_s26 + $0x240] ss:$24 sps:$4 sm:$0xff]  }
 0x1ce   : > { %1761 = vmatpush1.bf16.msra.mxu1 %v2539_v47  ;;  %1719 = vmatprep.subr.bf16.mxu0 %v2540_v48  ;;  %v2581_v11 = vld [vmem:[%s3241_s26 + $0x570] ss:$24 sps:$4 sm:$0xff]   ;;  %v2584_v13 = vld [vmem:[%s3241_s26 + $0x544] ss:$24 sps:$4 sm:$0xff]   ;;  %v2587_v15 = vld [vmem:[%s3241_s26 + $0x540] ss:$24 sps:$4 sm:$0xff]  }
 0x1cf   : > { %1762 = vmatprep.subr.bf16.mxu1 %v2542_v49  ;;  %v3302_v16 = vld [vmem:[#allocation2 + $0x14] ss:$8 sps:$4 sm:$0xff]   ;;  %v3305_v18 = vld [vmem:[#allocation2 + $0x4] ss:$8 sps:$4 sm:$0xff]   ;;  %v2592_v23 = vld [vmem:[%s3241_s26 + $0x210] ss:$24 sps:$4 sm:$0xff]  }
 0x1d0   : > { %v2588_v17 = vld [vmem:[%s3241_s26 + $0x214] ss:$24 sps:$4 sm:$0xff]   ;;  %1743 = vmatprep.mubr.bf16.mxu0 %v3302_v16  ;;  %1786 = vmatprep.mubr.bf16.mxu1 %v3305_v18  ;;  %v2593_v25 = vld [vmem:[%s3241_s26 + $0x510] ss:$24 sps:$4 sm:$0xff]   ;;  %v2594_v26 = vld [vmem:[%s3241_s26 + $0x1e4] ss:$24 sps:$4 sm:$0xff]  }
 0x1d1   : > { %1720 = vmatpush1.bf16.msra.mxu0 %v2544_v50  ;;  %v2590_v19 = vld [vmem:[%s3241_s26 + $0x514] ss:$24 sps:$4 sm:$0xff]   ;;  %v2596_v20 = vld [vmem:[%s3241_s26 + $0x4e4] ss:$24 sps:$4 sm:$0xff]   ;;  %v2598_v21 = vld [vmem:[%s3241_s26 + $0x1e0] ss:$24 sps:$4 sm:$0xff]  }
 0x1d2   : > { %1763 = vmatpush1.bf16.msra.mxu1 %v2545_v51  ;;  %1721 = vmatprep.subr.bf16.mxu0 %v2546_v52  ;;  %v2599_v22 = vld [vmem:[%s3241_s26 + $0x4e0] ss:$24 sps:$4 sm:$0xff]   ;;  %v2600_v24 = vld [vmem:[%s3241_s26 + $0x1b4] ss:$24 sps:$4 sm:$0xff]   ;;  %v2604_v28 = vld [vmem:[%s3241_s26 + $0x1b0] ss:$24 sps:$4 sm:$0xff]  }
 0x1d3   : > { %1764 = vmatprep.subr.bf16.mxu1 %v2548_v53  ;;  %v2602_v27 = vld [vmem:[%s3241_s26 + $0x4b4] ss:$24 sps:$4 sm:$0xff]   ;;  %v2605_v31 = vld [vmem:[%s3241_s26 + $0x4b0] ss:$24 sps:$4 sm:$0xff]   ;;  %v2606_v33 = vld [vmem:[%s3241_s26 + $0x184] ss:$24 sps:$4 sm:$0xff]  }
 0x1d4   : > { %v2608_v34 = vld [vmem:[%s3241_s26 + $0x484] ss:$24 sps:$4 sm:$0xff]   ;;  %v2610_v29 = vld [vmem:[%s3241_s26 + $0x180] ss:$24 sps:$4 sm:$0xff]   ;;  %v3326_v36 = vld [vmem:[#allocation2 + $0x10] ss:$8 sps:$4 sm:$0xff]  }
 0x1d5   : > { %1722 = vmatpush1.bf16.msra.mxu0 %v2550_v54  ;;  %v2611_v30 = vld [vmem:[%s3241_s26 + $0x480] ss:$24 sps:$4 sm:$0xff]   ;;  %v2620_v32 = vld [vmem:[%s3241_s26 + $0x15c] ss:$24 sps:$4 sm:$0xff]   ;;  %v2626_v40 = vld [vmem:[%s3241_s26 + $0x12c] ss:$24 sps:$4 sm:$0xff]  }
 0x1d6   : > { %1765 = vmatpush1.bf16.msra.mxu1 %v2551_v55  ;;  %1723 = vmatprep.subr.bf16.mxu0 %v2552_v56  ;;  %v2623_v35 = vld [vmem:[%s3241_s26 + $0x45c] ss:$24 sps:$4 sm:$0xff]   ;;  %v3328_v37 = vld [vmem:[#allocation2] ss:$8 sps:$4 sm:$0xff]   ;;  %v2629_v41 = vld [vmem:[%s3241_s26 + $0x42c] ss:$24 sps:$4 sm:$0xff]  }
 0x1d7   : > { %1766 = vmatprep.subr.bf16.mxu1 %v2554_v57  ;;  %v2618_v38 = vld [vmem:[%s3241_s26 + $0x158] ss:$24 sps:$4 sm:$0xff]   ;;  %v2624_v42 = vld [vmem:[%s3241_s26 + $0x128] ss:$24 sps:$4 sm:$0xff]   ;;  %v2632_v44 = vld [vmem:[%s3241_s26 + $0xfc] ss:$24 sps:$4 sm:$0xff]  }
 0x1d8   : > { %v2621_v39 = vld [vmem:[%s3241_s26 + $0x458] ss:$24 sps:$4 sm:$0xff]   ;;  %v2627_v43 = vld [vmem:[%s3241_s26 + $0x428] ss:$24 sps:$4 sm:$0xff]   ;;  %v2635_v45 = vld [vmem:[%s3241_s26 + $0x3fc] ss:$24 sps:$4 sm:$0xff]  }
 0x1d9   : > { %1724 = vmatpush1.bf16.msra.mxu0 %v2556_v58  ;;  %v2630_v46 = vld [vmem:[%s3241_s26 + $0xf8] ss:$24 sps:$4 sm:$0xff]   ;;  %v2638_v48 = vld [vmem:[%s3241_s26 + $0xcc] ss:$24 sps:$4 sm:$0xff]   ;;  %v2636_v50 = vld [vmem:[%s3241_s26 + $0xc8] ss:$24 sps:$4 sm:$0xff]  }
 0x1da   : > { %1767 = vmatpush1.bf16.msra.mxu1 %v2557_v59  ;;  %1725 = vmatprep.subr.bf16.mxu0 %v2558_v60  ;;  %v2633_v47 = vld [vmem:[%s3241_s26 + $0x3f8] ss:$24 sps:$4 sm:$0xff]   ;;  %v2641_v49 = vld [vmem:[%s3241_s26 + $0x3cc] ss:$24 sps:$4 sm:$0xff]   ;;  %v2639_v51 = vld [vmem:[%s3241_s26 + $0x3c8] ss:$24 sps:$4 sm:$0xff]  }
 0x1db   : > { %1768 = vmatprep.subr.bf16.mxu1 %v2560_v61  ;;  %v2644_v52 = vld [vmem:[%s3241_s26 + $0x9c] ss:$24 sps:$4 sm:$0xff]   ;;  %v2642_v54 = vld [vmem:[%s3241_s26 + $0x98] ss:$24 sps:$4 sm:$0xff]   ;;  %v2650_v56 = vld [vmem:[%s3241_s26 + $0x6c] ss:$24 sps:$4 sm:$0xff]  }
 0x1dc   : > { %v2647_v53 = vld [vmem:[%s3241_s26 + $0x39c] ss:$24 sps:$4 sm:$0xff]   ;;  %v2645_v55 = vld [vmem:[%s3241_s26 + $0x398] ss:$24 sps:$4 sm:$0xff]   ;;  %v2653_v57 = vld [vmem:[%s3241_s26 + $0x36c] ss:$24 sps:$4 sm:$0xff]  }
 0x1dd   : > { %1726 = vmatpush1.bf16.msra.mxu0 %v2562_v62  ;;  %v2648_v58 = vld [vmem:[%s3241_s26 + $0x68] ss:$24 sps:$4 sm:$0xff]   ;;  %v2656_v60 = vld [vmem:[%s3241_s26 + $0x3c] ss:$24 sps:$4 sm:$0xff]   ;;  %v2654_v62 = vld [vmem:[%s3241_s26 + $0x38] ss:$24 sps:$4 sm:$0xff]  }
 0x1de   : > { %1769 = vmatpush1.bf16.msra.mxu1 %v2563_v63  ;;  %1727 = vmatprep.subr.bf16.mxu0 %v2564_v0  ;;  %v2651_v59 = vld [vmem:[%s3241_s26 + $0x368] ss:$24 sps:$4 sm:$0xff]   ;;  %v2659_v61 = vld [vmem:[%s3241_s26 + $0x33c] ss:$24 sps:$4 sm:$0xff]   ;;  %v2657_v63 = vld [vmem:[%s3241_s26 + $0x338] ss:$24 sps:$4 sm:$0xff]  }
 0x1df   : > { %1770 = vmatprep.subr.bf16.mxu1 %v2566_v1  ;;  %v2662_v0 = vld [vmem:[%s3241_s26 + $0xc] ss:$24 sps:$4 sm:$0xff]   ;;  %s2400_s24 = smul.u32 384, %s3024_s21  ;;  %s2028_s28 = sshll.u32 %s3251_s14, 4  ;;  %s3479_s28 = int_to_ptr.vmem [resolvable:$true] %s2028_s28 }
 0x1e0   : > { %v2665_v1 = vld [vmem:[%s3241_s26 + $0x30c] ss:$24 sps:$4 sm:$0xff]   ;;  %s2012_s21 = scalar_lea.sflag [#allocation5], %s3238_s9  ;;  %s2944_s15 = scalar_lea.vmem %s3479_s28, 768 }
 0x1e1   : > { %1728 = vmatpush2.bf16.msra.mxu0 %v2568_v2  ;;  %v2660_v2 = vld [vmem:[%s3241_s26 + $0x8] ss:$24 sps:$4 sm:$0xff]   ;;  %s3477_s16 = scalar_lea.hbm %s3533_s5, %s2400_s24  ;;  %p2945_p7 = scmp.ne.s32.totalorder %s3479_s28, %s2944_s15 }
 0x1e2   : > { %1771 = vmatpush2.bf16.msra.mxu1 %v2569_v3  ;;  %1729 = vmatprep.subr.bf16.mxu0 %v2570_v4  ;;  %v2663_v3 = vld [vmem:[%s3241_s26 + $0x308] ss:$24 sps:$4 sm:$0xff]   ;;  %v2668_v4 = vld [vmem:[%s3241_s26 + $0x2dc] ss:$24 sps:$4 sm:$0xff]   ;;  %p3558_p4 = scmp.ne.s32.totalorder %s3545_s29, 0  ;;  %s3044_s17 = smov [#allocation12]  }
 0x1e3   : > { %1772 = vmatprep.subr.bf16.mxu1 %v2572_v5  ;;  %v2671_v5 = vld [vmem:[%s3241_s26 + $0x5dc] ss:$24 sps:$4 sm:$0xff]   ;;  %s2948_s23 = sshll.u32 %s3044_s17, 4  ;;  %s2949_s23 = int_to_ptr.vmem [resolvable:$false] %s2948_s23 }
 0x1e4   : > { %p2946_p10 = pnand %p2945_p7, %p3558_p4  ;;  %s2950_s27 = scalar_lea.vmem %s2949_s23, 1536 }
 0x1e5   : > { %1730 = vmatpush2.bf16.msra.mxu0 %v2574_v6  ;;  %v2666_v6 = vld [vmem:[%s3241_s26 + $0x2d8] ss:$24 sps:$4 sm:$0xff]   ;;  %p2951_p3 = scmp.lt.s32.totalorder %s3479_s28, %s2949_s23  ;;  %p2952_p8 = scmp.lt.s32.totalorder %s2950_s27, %s2944_s15 }
 0x1e6   : > { %1773 = vmatpush2.bf16.msra.mxu1 %v2575_v7  ;;  %1731 = vmatprep.subr.bf16.mxu0 %v2576_v8  ;;  %v2669_v7 = vld [vmem:[%s3241_s26 + $0x5d8] ss:$24 sps:$4 sm:$0xff]   ;;  %v2674_v8 = vld [vmem:[%s3241_s26 + $0x2ac] ss:$24 sps:$4 sm:$0xff]   ;;  %p2947_p0 = pneg %p2946_p10 }
 0x1e7   : > { %1774 = vmatprep.subr.bf16.mxu1 %v2578_v9  ;;  %v2677_v9 = vld [vmem:[%s3241_s26 + $0x5ac] ss:$24 sps:$4 sm:$0xff]   ;;  %p2953_p12 = por %p2952_p8, %p2951_p3 }
 0x1e9   : > { %1732 = vmatpush2.bf16.msra.mxu0 %v2580_v10  ;;  %v2672_v10 = vld [vmem:[%s3241_s26 + $0x2a8] ss:$24 sps:$4 sm:$0xff]   ;;  %p2954_p2 = pnand %p2953_p12, %p2947_p0 }
 0x1ea   : > { %1775 = vmatpush2.bf16.msra.mxu1 %v2581_v11  ;;  %1733 = vmatprep.subr.bf16.mxu0 %v2582_v12  ;;  %v2675_v11 = vld [vmem:[%s3241_s26 + $0x5a8] ss:$24 sps:$4 sm:$0xff]   ;;  %v2680_v12 = vld [vmem:[%s3241_s26 + $0x27c] ss:$24 sps:$4 sm:$0xff]  }
 0x1eb   : > { %1776 = vmatprep.subr.bf16.mxu1 %v2584_v13  ;;  %v2683_v13 = vld [vmem:[%s3241_s26 + $0x57c] ss:$24 sps:$4 sm:$0xff]  }
 0x1ed   : > { %1734 = vmatpush2.bf16.msra.mxu0 %v2586_v14  ;;  %v2678_v14 = vld [vmem:[%s3241_s26 + $0x278] ss:$24 sps:$4 sm:$0xff]  }
 0x1ee   : > { %1777 = vmatpush2.bf16.msra.mxu1 %v2587_v15  ;;  %1735 = vmatprep.subr.bf16.mxu0 %v2588_v17  ;;  %v2681_v15 = vld [vmem:[%s3241_s26 + $0x578] ss:$24 sps:$4 sm:$0xff]   ;;  %v2686_v17 = vld [vmem:[%s3241_s26 + $0x24c] ss:$24 sps:$4 sm:$0xff]  }
 0x1ef   : > { %1778 = vmatprep.subr.bf16.mxu1 %v2590_v19  ;;  %v2689_v19 = vld [vmem:[%s3241_s26 + $0x54c] ss:$24 sps:$4 sm:$0xff]  }
 0x1f1   : > { %1736 = vmatpush2.bf16.msra.mxu0 %v2592_v23  ;;  %v2684_v23 = vld [vmem:[%s3241_s26 + $0x248] ss:$24 sps:$4 sm:$0xff]  }
 0x1f2   : > { %1779 = vmatpush2.bf16.msra.mxu1 %v2593_v25  ;;  %1737 = vmatprep.subr.bf16.mxu0 %v2594_v26  ;;  %v2687_v25 = vld [vmem:[%s3241_s26 + $0x548] ss:$24 sps:$4 sm:$0xff]   ;;  %v2692_v26 = vld [vmem:[%s3241_s26 + $0x21c] ss:$24 sps:$4 sm:$0xff]  }
 0x1f3   : > { %1780 = vmatprep.subr.bf16.mxu1 %v2596_v20  ;;  %v2695_v20 = vld [vmem:[%s3241_s26 + $0x51c] ss:$24 sps:$4 sm:$0xff]  }
 0x1f5   : > { %1738 = vmatpush2.bf16.msra.mxu0 %v2598_v21  ;;  %v2690_v21 = vld [vmem:[%s3241_s26 + $0x218] ss:$24 sps:$4 sm:$0xff]  }
 0x1f6   : > { %1781 = vmatpush2.bf16.msra.mxu1 %v2599_v22  ;;  %1739 = vmatprep.subr.bf16.mxu0 %v2600_v24  ;;  %v2693_v22 = vld [vmem:[%s3241_s26 + $0x518] ss:$24 sps:$4 sm:$0xff]   ;;  %v2698_v24 = vld [vmem:[%s3241_s26 + $0x1ec] ss:$24 sps:$4 sm:$0xff]  }
 0x1f7   : > { %1782 = vmatprep.subr.bf16.mxu1 %v2602_v27  ;;  %v2701_v27 = vld [vmem:[%s3241_s26 + $0x4ec] ss:$24 sps:$4 sm:$0xff]  }
 0x1f9   : > { %1740 = vmatpush2.bf16.msra.mxu0 %v2604_v28  ;;  %v2696_v28 = vld [vmem:[%s3241_s26 + $0x1e8] ss:$24 sps:$4 sm:$0xff]  }
 0x1fa   : > { %1783 = vmatpush2.bf16.msra.mxu1 %v2605_v31  ;;  %1741 = vmatprep.subr.bf16.mxu0 %v2606_v33  ;;  %v2699_v31 = vld [vmem:[%s3241_s26 + $0x4e8] ss:$24 sps:$4 sm:$0xff]   ;;  %v2704_v33 = vld [vmem:[%s3241_s26 + $0x1bc] ss:$24 sps:$4 sm:$0xff]  }
 0x1fb   : > { %1784 = vmatprep.subr.bf16.mxu1 %v2608_v34  ;;  %v2707_v34 = vld [vmem:[%s3241_s26 + $0x4bc] ss:$24 sps:$4 sm:$0xff]  }
 0x1fd   : > { %1742 = vmatpush2.bf16.msra.mxu0 %v2610_v29  ;;  %v2702_v29 = vld [vmem:[%s3241_s26 + $0x1b8] ss:$24 sps:$4 sm:$0xff]  }
 0x1fe   : > { %1785 = vmatpush2.bf16.msra.mxu1 %v2611_v30  ;;  %1797 = vmatprep.subr.bf16.mxu0 %v2620_v32  ;;  %v2705_v30 = vld [vmem:[%s3241_s26 + $0x4b8] ss:$24 sps:$4 sm:$0xff]   ;;  %v2710_v32 = vld [vmem:[%s3241_s26 + $0x18c] ss:$24 sps:$4 sm:$0xff]  }
 0x1ff   : > { %1840 = vmatprep.subr.bf16.mxu1 %v2623_v35  ;;  %v2713_v35 = vld [vmem:[%s3241_s26 + $0x48c] ss:$24 sps:$4 sm:$0xff]  }
 0x200   : > { %1744 = vmatmul.mubr.bf16.vlgmr.msra.gmra.mxu0 %v3326_v36 }
 0x201   : > { %1787 = vmatmul.mubr.bf16.vlgmr.msra.gmra.mxu1 %v3328_v37  ;;  %1798 = vmatpush1.bf16.msra.mxu0 %v2618_v38  ;;  %v2708_v38 = vld [vmem:[%s3241_s26 + $0x188] ss:$24 sps:$4 sm:$0xff]  }
 0x202   : > { %1841 = vmatpush1.bf16.msra.mxu1 %v2621_v39  ;;  %1799 = vmatprep.subr.bf16.mxu0 %v2626_v40  ;;  %v2711_v39 = vld [vmem:[%s3241_s26 + $0x488] ss:$24 sps:$4 sm:$0xff]   ;;  %v2716_v40 = vld [vmem:[%s3241_s26 + $0x164] ss:$24 sps:$4 sm:$0xff]  }
 0x203   : > { %1842 = vmatprep.subr.bf16.mxu1 %v2629_v41  ;;  %1829 = vmatprep.mubr.bf16.mxu0 %v3302_v16  ;;  %v2719_v41 = vld [vmem:[%s3241_s26 + $0x464] ss:$24 sps:$4 sm:$0xff]  }
 0x204   : > { %1872 = vmatprep.mubr.bf16.mxu1 %v3305_v18 }
 0x205   : > { %1800 = vmatpush1.bf16.msra.mxu0 %v2624_v42  ;;  %v2714_v42 = vld [vmem:[%s3241_s26 + $0x160] ss:$24 sps:$4 sm:$0xff]  }
 0x206   : > { %1843 = vmatpush1.bf16.msra.mxu1 %v2627_v43  ;;  %1801 = vmatprep.subr.bf16.mxu0 %v2632_v44  ;;  %v2717_v43 = vld [vmem:[%s3241_s26 + $0x460] ss:$24 sps:$4 sm:$0xff]   ;;  %v2722_v44 = vld [vmem:[%s3241_s26 + $0x134] ss:$24 sps:$4 sm:$0xff]  }
 0x207   : > { %1844 = vmatprep.subr.bf16.mxu1 %v2635_v45  ;;  %v2725_v45 = vld [vmem:[%s3241_s26 + $0x434] ss:$24 sps:$4 sm:$0xff]  }
 0x209   : > { %1802 = vmatpush1.bf16.msra.mxu0 %v2630_v46  ;;  %v2720_v46 = vld [vmem:[%s3241_s26 + $0x130] ss:$24 sps:$4 sm:$0xff]  }
 0x20a   : > { %1845 = vmatpush1.bf16.msra.mxu1 %v2633_v47  ;;  %1803 = vmatprep.subr.bf16.mxu0 %v2638_v48  ;;  %v2723_v47 = vld [vmem:[%s3241_s26 + $0x430] ss:$24 sps:$4 sm:$0xff]   ;;  %v2728_v48 = vld [vmem:[%s3241_s26 + $0x104] ss:$24 sps:$4 sm:$0xff]  }
 0x20b   : > { %1846 = vmatprep.subr.bf16.mxu1 %v2641_v49  ;;  %v2731_v49 = vld [vmem:[%s3241_s26 + $0x404] ss:$24 sps:$4 sm:$0xff]  }
 0x20d   : > { %1804 = vmatpush1.bf16.msra.mxu0 %v2636_v50  ;;  %v2726_v50 = vld [vmem:[%s3241_s26 + $0x100] ss:$24 sps:$4 sm:$0xff]  }
 0x20e   : > { %1847 = vmatpush1.bf16.msra.mxu1 %v2639_v51  ;;  %1805 = vmatprep.subr.bf16.mxu0 %v2644_v52  ;;  %v2729_v51 = vld [vmem:[%s3241_s26 + $0x400] ss:$24 sps:$4 sm:$0xff]   ;;  %v2734_v52 = vld [vmem:[%s3241_s26 + $0xd4] ss:$24 sps:$4 sm:$0xff]  }
 0x20f   : > { %1848 = vmatprep.subr.bf16.mxu1 %v2647_v53  ;;  %v2737_v53 = vld [vmem:[%s3241_s26 + $0x3d4] ss:$24 sps:$4 sm:$0xff]  }
 0x211   : > { %1806 = vmatpush1.bf16.msra.mxu0 %v2642_v54  ;;  %v2732_v54 = vld [vmem:[%s3241_s26 + $0xd0] ss:$24 sps:$4 sm:$0xff]  }
 0x212   : > { %1849 = vmatpush1.bf16.msra.mxu1 %v2645_v55  ;;  %1807 = vmatprep.subr.bf16.mxu0 %v2650_v56  ;;  %v2743_v55 = vld [vmem:[%s3241_s26 + $0x3a4] ss:$24 sps:$4 sm:$0xff]   ;;  %v2738_v56 = vld [vmem:[%s3241_s26 + $0xa0] ss:$24 sps:$4 sm:$0xff]  }
 0x213   : > { %1850 = vmatprep.subr.bf16.mxu1 %v2653_v57  ;;  %v2741_v57 = vld [vmem:[%s3241_s26 + $0x3a0] ss:$24 sps:$4 sm:$0xff]  }
 0x215   : > { %1808 = vmatpush1.bf16.msra.mxu0 %v2648_v58  ;;  %v2746_v58 = vld [vmem:[%s3241_s26 + $0x74] ss:$24 sps:$4 sm:$0xff]  }
 0x216   : > { %1851 = vmatpush1.bf16.msra.mxu1 %v2651_v59  ;;  %1809 = vmatprep.subr.bf16.mxu0 %v2656_v60  ;;  %v2749_v59 = vld [vmem:[%s3241_s26 + $0x374] ss:$24 sps:$4 sm:$0xff]   ;;  %v2744_v60 = vld [vmem:[%s3241_s26 + $0x70] ss:$24 sps:$4 sm:$0xff]  }
 0x217   : > { %1852 = vmatprep.subr.bf16.mxu1 %v2659_v61  ;;  %v2747_v61 = vld [vmem:[%s3241_s26 + $0x370] ss:$24 sps:$4 sm:$0xff]  }
 0x219   : > { %1810 = vmatpush1.bf16.msra.mxu0 %v2654_v62  ;;  %v2752_v62 = vld [vmem:[%s3241_s26 + $0x44] ss:$24 sps:$4 sm:$0xff]  }
 0x21a   : > { %1853 = vmatpush1.bf16.msra.mxu1 %v2657_v63  ;;  %1811 = vmatprep.subr.bf16.mxu0 %v2662_v0  ;;  %v2755_v63 = vld [vmem:[%s3241_s26 + $0x344] ss:$24 sps:$4 sm:$0xff]   ;;  %v2750_v0 = vld [vmem:[%s3241_s26 + $0x40] ss:$24 sps:$4 sm:$0xff]  }
 0x21b   : > { %1854 = vmatprep.subr.bf16.mxu1 %v2665_v1  ;;  %v2753_v1 = vld [vmem:[%s3241_s26 + $0x340] ss:$24 sps:$4 sm:$0xff]  }
 0x21d   : > { %1812 = vmatpush1.bf16.msra.mxu0 %v2660_v2  ;;  %v2758_v2 = vld [vmem:[%s3241_s26 + $0x14] ss:$24 sps:$4 sm:$0xff]  }
 0x21e   : > { %1855 = vmatpush1.bf16.msra.mxu1 %v2663_v3  ;;  %1813 = vmatprep.subr.bf16.mxu0 %v2668_v4  ;;  %v2761_v3 = vld [vmem:[%s3241_s26 + $0x314] ss:$24 sps:$4 sm:$0xff]   ;;  %v2756_v4 = vld [vmem:[%s3241_s26 + $0x10] ss:$24 sps:$4 sm:$0xff]  }
 0x21f   : > { %1856 = vmatprep.subr.bf16.mxu1 %v2671_v5  ;;  %v2759_v5 = vld [vmem:[%s3241_s26 + $0x310] ss:$24 sps:$4 sm:$0xff]  }
 0x221   : > { %1814 = vmatpush2.bf16.msra.mxu0 %v2666_v6  ;;  %v2764_v6 = vld [vmem:[%s3241_s26 + $0x2e4] ss:$24 sps:$4 sm:$0xff]  }
 0x222   : > { %1857 = vmatpush2.bf16.msra.mxu1 %v2669_v7  ;;  %1815 = vmatprep.subr.bf16.mxu0 %v2674_v8  ;;  %v2767_v7 = vld [vmem:[%s3241_s26 + $0x5e4] ss:$24 sps:$4 sm:$0xff]   ;;  %v2762_v8 = vld [vmem:[%s3241_s26 + $0x2e0] ss:$24 sps:$4 sm:$0xff]  }
 0x223   : > { %1858 = vmatprep.subr.bf16.mxu1 %v2677_v9  ;;  %v2765_v9 = vld [vmem:[%s3241_s26 + $0x5e0] ss:$24 sps:$4 sm:$0xff]  }
 0x225   : > { %1816 = vmatpush2.bf16.msra.mxu0 %v2672_v10  ;;  %v2770_v10 = vld [vmem:[%s3241_s26 + $0x2b4] ss:$24 sps:$4 sm:$0xff]  }
 0x226   : > { %1859 = vmatpush2.bf16.msra.mxu1 %v2675_v11  ;;  %1817 = vmatprep.subr.bf16.mxu0 %v2680_v12  ;;  %v2773_v11 = vld [vmem:[%s3241_s26 + $0x5b4] ss:$24 sps:$4 sm:$0xff]   ;;  %v2768_v12 = vld [vmem:[%s3241_s26 + $0x2b0] ss:$24 sps:$4 sm:$0xff]  }
 0x227   : > { %1860 = vmatprep.subr.bf16.mxu1 %v2683_v13  ;;  %v2771_v13 = vld [vmem:[%s3241_s26 + $0x5b0] ss:$24 sps:$4 sm:$0xff]  }
 0x229   : > { %1818 = vmatpush2.bf16.msra.mxu0 %v2678_v14  ;;  %v2776_v14 = vld [vmem:[%s3241_s26 + $0x284] ss:$24 sps:$4 sm:$0xff]  }
 0x22a   : > { %1861 = vmatpush2.bf16.msra.mxu1 %v2681_v15  ;;  %1819 = vmatprep.subr.bf16.mxu0 %v2686_v17  ;;  %v2779_v15 = vld [vmem:[%s3241_s26 + $0x584] ss:$24 sps:$4 sm:$0xff]   ;;  %v2774_v17 = vld [vmem:[%s3241_s26 + $0x280] ss:$24 sps:$4 sm:$0xff]  }
 0x22b   : > { %1862 = vmatprep.subr.bf16.mxu1 %v2689_v19  ;;  %v2777_v19 = vld [vmem:[%s3241_s26 + $0x580] ss:$24 sps:$4 sm:$0xff]  }
 0x22d   : > { %1820 = vmatpush2.bf16.msra.mxu0 %v2684_v23  ;;  %v2782_v23 = vld [vmem:[%s3241_s26 + $0x254] ss:$24 sps:$4 sm:$0xff]  }
 0x22e   : > { %1863 = vmatpush2.bf16.msra.mxu1 %v2687_v25  ;;  %1821 = vmatprep.subr.bf16.mxu0 %v2692_v26  ;;  %v2785_v25 = vld [vmem:[%s3241_s26 + $0x554] ss:$24 sps:$4 sm:$0xff]   ;;  %v2780_v26 = vld [vmem:[%s3241_s26 + $0x250] ss:$24 sps:$4 sm:$0xff]  }
 0x22f   : > { %1864 = vmatprep.subr.bf16.mxu1 %v2695_v20  ;;  %v2783_v20 = vld [vmem:[%s3241_s26 + $0x550] ss:$24 sps:$4 sm:$0xff]  }
 0x231   : > { %1822 = vmatpush2.bf16.msra.mxu0 %v2690_v21  ;;  %v2788_v21 = vld [vmem:[%s3241_s26 + $0x224] ss:$24 sps:$4 sm:$0xff]  }
 0x232   : > { %1865 = vmatpush2.bf16.msra.mxu1 %v2693_v22  ;;  %1823 = vmatprep.subr.bf16.mxu0 %v2698_v24  ;;  %v2791_v22 = vld [vmem:[%s3241_s26 + $0x524] ss:$24 sps:$4 sm:$0xff]   ;;  %v2786_v24 = vld [vmem:[%s3241_s26 + $0x220] ss:$24 sps:$4 sm:$0xff]  }
 0x233   : > { %1866 = vmatprep.subr.bf16.mxu1 %v2701_v27  ;;  %v2789_v27 = vld [vmem:[%s3241_s26 + $0x520] ss:$24 sps:$4 sm:$0xff]  }
 0x235   : > { %1824 = vmatpush2.bf16.msra.mxu0 %v2696_v28  ;;  %v2794_v28 = vld [vmem:[%s3241_s26 + $0x1f4] ss:$24 sps:$4 sm:$0xff]  }
 0x236   : > { %1867 = vmatpush2.bf16.msra.mxu1 %v2699_v31  ;;  %1825 = vmatprep.subr.bf16.mxu0 %v2704_v33  ;;  %v2797_v31 = vld [vmem:[%s3241_s26 + $0x4f4] ss:$24 sps:$4 sm:$0xff]   ;;  %v2792_v33 = vld [vmem:[%s3241_s26 + $0x1f0] ss:$24 sps:$4 sm:$0xff]  }
 0x237   : > { %1868 = vmatprep.subr.bf16.mxu1 %v2707_v34  ;;  %v2795_v34 = vld [vmem:[%s3241_s26 + $0x4f0] ss:$24 sps:$4 sm:$0xff]  }
 0x239   : > { %1826 = vmatpush2.bf16.msra.mxu0 %v2702_v29  ;;  %v2800_v29 = vld [vmem:[%s3241_s26 + $0x1c4] ss:$24 sps:$4 sm:$0xff]  }
 0x23a   : > { %1869 = vmatpush2.bf16.msra.mxu1 %v2705_v30  ;;  %1827 = vmatprep.subr.bf16.mxu0 %v2710_v32  ;;  %v2803_v30 = vld [vmem:[%s3241_s26 + $0x4c4] ss:$24 sps:$4 sm:$0xff]   ;;  %v2798_v32 = vld [vmem:[%s3241_s26 + $0x1c0] ss:$24 sps:$4 sm:$0xff]  }
 0x23b   : > { %1870 = vmatprep.subr.bf16.mxu1 %v2713_v35  ;;  %v2801_v35 = vld [vmem:[%s3241_s26 + $0x4c0] ss:$24 sps:$4 sm:$0xff]  }
 0x23d   : > { %1828 = vmatpush2.bf16.msra.mxu0 %v2708_v38  ;;  %v2806_v38 = vld [vmem:[%s3241_s26 + $0x194] ss:$24 sps:$4 sm:$0xff]  }
 0x23e   : > { %1871 = vmatpush2.bf16.msra.mxu1 %v2711_v39  ;;  %1883 = vmatprep.subr.bf16.mxu0 %v2716_v40  ;;  %v2809_v39 = vld [vmem:[%s3241_s26 + $0x494] ss:$24 sps:$4 sm:$0xff]   ;;  %v2804_v40 = vld [vmem:[%s3241_s26 + $0x190] ss:$24 sps:$4 sm:$0xff]  }
 0x23f   : > { %1926 = vmatprep.subr.bf16.mxu1 %v2719_v41  ;;  %v2807_v41 = vld [vmem:[%s3241_s26 + $0x490] ss:$24 sps:$4 sm:$0xff]  }
 0x240   : > { %1830 = vmatmul.mubr.bf16.vlgmr.msra.gmra.mxu0 %v3326_v36 }
 0x241   : > { %1873 = vmatmul.mubr.bf16.vlgmr.msra.gmra.mxu1 %v3328_v37  ;;  %1884 = vmatpush1.bf16.msra.mxu0 %v2714_v42  ;;  %v701_v42 = vlaneseq }
 0x242   : > { %1927 = vmatpush1.bf16.msra.mxu1 %v2717_v43  ;;  %1885 = vmatprep.subr.bf16.mxu0 %v2722_v44 }
 0x243   : > { %1928 = vmatprep.subr.bf16.mxu1 %v2725_v45  ;;  %1915 = vmatprep.mubr.bf16.mxu0 %v3302_v16  ;;  %v2735_v16 = vld [vmem:[%s3241_s26 + $0x3d0] ss:$24 sps:$4 sm:$0xff]   ;;  %v702_v43 = vshrl.u32 %v701_v42, 7 }
 0x244   : > { %1958 = vmatprep.mubr.bf16.mxu1 %v3305_v18  ;;  %v2740_v18 = vld [vmem:[%s3241_s26 + $0xa4] ss:$24 sps:$4 sm:$0xff]  }
 0x245   : > { %1886 = vmatpush1.bf16.msra.mxu0 %v2720_v46  ;;  %v703_v44 = vsub.s32 0, %v702_v43  ;;  %v699_v45 = vld [vmem:[%s3249_s13] sm:$0x3f]  ;;  %v707_v46 = vsub.s32 1, %v702_v43 }
 0x246   : > { %1929 = vmatpush1.bf16.msra.mxu1 %v2723_v47  ;;  %1887 = vmatprep.subr.bf16.mxu0 %v2728_v48 }
 0x247   : > { %1930 = vmatprep.subr.bf16.mxu1 %v2731_v49  ;;  %v704_v47 = vrot.slane %v699_v45, %v703_v44  ;;  %v708_v48 = vrot.slane %v699_v45, %v707_v46 }
 0x249   : > { %1888 = vmatpush1.bf16.msra.mxu0 %v2726_v50 }
 0x24a   : > { %1931 = vmatpush1.bf16.msra.mxu1 %v2729_v51  ;;  %1889 = vmatprep.subr.bf16.mxu0 %v2734_v52 }
 0x24b   : > { %1932 = vmatprep.subr.bf16.mxu1 %v2737_v53 }
 0x24d   : > { %1890 = vmatpush1.bf16.msra.mxu0 %v2732_v54 }
 0x24e   : > { %1933 = vmatpush1.bf16.msra.mxu1 %v2735_v16  ;;  %1891 = vmatprep.subr.bf16.mxu0 %v2740_v18 }
 0x24f   : > { %1934 = vmatprep.subr.bf16.mxu1 %v2743_v55 }
 0x251   : > { %1892 = vmatpush1.bf16.msra.mxu0 %v2738_v56 }
 0x252   : > { %1935 = vmatpush1.bf16.msra.mxu1 %v2741_v57  ;;  %1893 = vmatprep.subr.bf16.mxu0 %v2746_v58 }
 0x253   : > { %1936 = vmatprep.subr.bf16.mxu1 %v2749_v59 }
 0x255   : > { %1894 = vmatpush1.bf16.msra.mxu0 %v2744_v60 }
 0x256   : > { %1937 = vmatpush1.bf16.msra.mxu1 %v2747_v61  ;;  %1895 = vmatprep.subr.bf16.mxu0 %v2752_v62 }
 0x257   : > { %1938 = vmatprep.subr.bf16.mxu1 %v2755_v63  ;;  %v711_v63 = vsub.s32 2, %v702_v43 }
 0x259   : > { %1896 = vmatpush1.bf16.msra.mxu0 %v2750_v0  ;;  %v715_v0 = vsub.s32 3, %v702_v43 }
 0x25a   : > { %1939 = vmatpush1.bf16.msra.mxu1 %v2753_v1  ;;  %1897 = vmatprep.subr.bf16.mxu0 %v2758_v2  ;;  %v712_v1 = vrot.slane %v699_v45, %v711_v63 }
 0x25b   : > { %1940 = vmatprep.subr.bf16.mxu1 %v2761_v3  ;;  %v716_v2 = vrot.slane %v699_v45, %v715_v0 }
 0x25d   : > { %1898 = vmatpush1.bf16.msra.mxu0 %v2756_v4 }
 0x25e   : > { %1941 = vmatpush1.bf16.msra.mxu1 %v2759_v5  ;;  %1899 = vmatprep.subr.bf16.mxu0 %v2764_v6 }
 0x25f   : > { %1942 = vmatprep.subr.bf16.mxu1 %v2767_v7 }
 0x261   : > { %1900 = vmatpush2.bf16.msra.mxu0 %v2762_v8 }
 0x262   : > { %1943 = vmatpush2.bf16.msra.mxu1 %v2765_v9  ;;  %1901 = vmatprep.subr.bf16.mxu0 %v2770_v10 }
 0x263   : > { %1944 = vmatprep.subr.bf16.mxu1 %v2773_v11 }
 0x265   : > { %1902 = vmatpush2.bf16.msra.mxu0 %v2768_v12 }
 0x266   : > { %1945 = vmatpush2.bf16.msra.mxu1 %v2771_v13  ;;  %1903 = vmatprep.subr.bf16.mxu0 %v2776_v14 }
 0x267   : > { %1946 = vmatprep.subr.bf16.mxu1 %v2779_v15 }
 0x269   : > { %1904 = vmatpush2.bf16.msra.mxu0 %v2774_v17 }
 0x26a   : > { %1947 = vmatpush2.bf16.msra.mxu1 %v2777_v19  ;;  %1905 = vmatprep.subr.bf16.mxu0 %v2782_v23 }
 0x26b   : > { %1948 = vmatprep.subr.bf16.mxu1 %v2785_v25 }
 0x26d   : > { %1906 = vmatpush2.bf16.msra.mxu0 %v2780_v26 }
 0x26e   : > { %1949 = vmatpush2.bf16.msra.mxu1 %v2783_v20  ;;  %1907 = vmatprep.subr.bf16.mxu0 %v2788_v21  ;;  %v719_v20 = vsub.s32 4, %v702_v43  ;;  %v723_v21 = vsub.s32 5, %v702_v43 }
 0x26f   : > { %1950 = vmatprep.subr.bf16.mxu1 %v2791_v22 }
 0x270   : > { %v720_v22 = vrot.slane %v699_v45, %v719_v20 }
 0x271   : > { %1908 = vmatpush2.bf16.msra.mxu0 %v2786_v24  ;;  %v724_v24 = vrot.slane %v699_v45, %v723_v21 }
 0x272   : > { %1951 = vmatpush2.bf16.msra.mxu1 %v2789_v27  ;;  %1909 = vmatprep.subr.bf16.mxu0 %v2794_v28 }
 0x273   : > { %1952 = vmatprep.subr.bf16.mxu1 %v2797_v31 }
 0x275   : > { %1910 = vmatpush2.bf16.msra.mxu0 %v2792_v33 }
 0x276   : > { %1953 = vmatpush2.bf16.msra.mxu1 %v2795_v34  ;;  %1911 = vmatprep.subr.bf16.mxu0 %v2800_v29 }
 0x277   : > { %1954 = vmatprep.subr.bf16.mxu1 %v2803_v30 }
 0x279   : > { %1912 = vmatpush2.bf16.msra.mxu0 %v2798_v32 }
 0x27a   : > { %1955 = vmatpush2.bf16.msra.mxu1 %v2801_v35  ;;  %1913 = vmatprep.subr.bf16.mxu0 %v2806_v38 }
 0x27b   : > { %1956 = vmatprep.subr.bf16.mxu1 %v2809_v39 }
 0x27d   : > { %1914 = vmatpush2.bf16.msra.mxu0 %v2804_v40 }
 0x27e   : > { %1957 = vmatpush2.bf16.msra.mxu1 %v2807_v41 }
 0x280   : > { %1916 = vmatmul.mubr.bf16.vlgmr.msra.gmra.mxu0 %v3326_v36 }
 0x281   : > { %1959 = vmatmul.mubr.bf16.vlgmr.msra.gmra.mxu1 %v3328_v37 }
 0x2c0   : > { %v1745_v49 = vpop.f32.mrf.mxu0 }
 0x2c1   : > { %v1788_v50 = vpop.f32.mrf.mxu1  ;;  %v1746_v51 = vadd.f32 %v1745_v49, %v704_v47 }
 0x2c2   : > { %v1747_v52 = vpop.f32.mrf.mxu0 }
 0x2c3   : > { %v1790_v53 = vpop.f32.mrf.mxu1  ;;  %v1789_v54 = vadd.f32 %v1788_v50, %v1746_v51  ;;  %v1748_v16 = vadd.f32 %v1747_v52, %v708_v48 }
 0x2c4   : > { %v1749_v18 = vpop.f32.mrf.mxu0 }
 0x2c5   : > { %v1792_v36 = vpop.f32.mrf.mxu1  ;;  %v1791_v55 = vadd.f32 %v1790_v53, %v1748_v16  ;;  %v1750_v37 = vadd.f32 %v1749_v18, %v704_v47 }
 0x2c6   : > { %v1751_v56 = vpop.f32.mrf.mxu0 }
 0x2c7   : > { %v2394_v57 = vpack.c.bf16 %v1791_v55, %v1789_v54  ;;  %v1752_v58 = vadd.f32 %v1751_v56, %v708_v48  ;;  %v1794_v59 = vpop.f32.mrf.mxu1  ;;  %v1793_v60 = vadd.f32 %v1792_v36, %v1750_v37 }
 0x2c9   : > { %2005 = vst [vmem:[%s3251_s14] sm:$0xff] %v2394_v57  ;;  %v1795_v61 = vadd.f32 %v1794_v59, %v1752_v58 }
 0x2cb   : > { %v2397_v62 = vpack.c.bf16 %v1795_v61, %v1793_v60 }
 0x2cd   : > { %2008 = vst [vmem:[%s3251_s14 + $0x18] sm:$0xff] %v2397_v62 }
 0x300   : > { %v1831_v3 = vpop.f32.mrf.mxu0 }
 0x301   : > { %v1874_v4 = vpop.f32.mrf.mxu1  ;;  %v1832_v5 = vadd.f32 %v1831_v3, %v712_v1 }
 0x302   : > { %v1833_v6 = vpop.f32.mrf.mxu0 }
 0x303   : > { %v1876_v7 = vpop.f32.mrf.mxu1  ;;  %v1875_v8 = vadd.f32 %v1874_v4, %v1832_v5  ;;  %v1834_v9 = vadd.f32 %v1833_v6, %v716_v2 }
 0x304   : > { %v1835_v10 = vpop.f32.mrf.mxu0 }
 0x305   : > { %v1878_v11 = vpop.f32.mrf.mxu1  ;;  %v1877_v12 = vadd.f32 %v1876_v7, %v1834_v9  ;;  %v1836_v13 = vadd.f32 %v1835_v10, %v712_v1 }
 0x306   : > { %v1837_v14 = vpop.f32.mrf.mxu0 }
 0x307   : > { %v2395_v15 = vpack.c.bf16 %v1877_v12, %v1875_v8  ;;  %v1838_v17 = vadd.f32 %v1837_v14, %v716_v2  ;;  %v1880_v19 = vpop.f32.mrf.mxu1  ;;  %v1879_v23 = vadd.f32 %v1878_v11, %v1836_v13 }
 0x309   : > { %2006 = vst [vmem:[%s3251_s14 + $0x8] sm:$0xff] %v2395_v15  ;;  %v1881_v25 = vadd.f32 %v1880_v19, %v1838_v17 }
 0x30b   : > { %v2398_v26 = vpack.c.bf16 %v1881_v25, %v1879_v23 }
 0x30d   : > { %2009 = vst [vmem:[%s3251_s14 + $0x20] sm:$0xff] %v2398_v26 }
 0x340   : > { %v1917_v27 = vpop.f32.mrf.mxu0 }
 0x341   : > { %v1960_v28 = vpop.f32.mrf.mxu1  ;;  %v1918_v31 = vadd.f32 %v1917_v27, %v720_v22 }
 0x342   : > { %v1919_v33 = vpop.f32.mrf.mxu0 }
 0x343   : > { %v1962_v34 = vpop.f32.mrf.mxu1  ;;  %v1920_v29 = vadd.f32 %v1919_v33, %v724_v24  ;;  %v1961_v35 = vadd.f32 %v1960_v28, %v1918_v31 }
 0x344   : > { %v1921_v30 = vpop.f32.mrf.mxu0 }
 0x345   : > { %v1964_v32 = vpop.f32.mrf.mxu1  ;;  %v1963_v38 = vadd.f32 %v1962_v34, %v1920_v29  ;;  %v1922_v39 = vadd.f32 %v1921_v30, %v720_v22 }
 0x346   : > { %v1923_v40 = vpop.f32.mrf.mxu0 }
 0x347   : > { %v2396_v41 = vpack.c.bf16 %v1963_v38, %v1961_v35  ;;  %v1924_v42 = vadd.f32 %v1923_v40, %v724_v24  ;;  %v1966_v43 = vpop.f32.mrf.mxu1  ;;  %v1965_v44 = vadd.f32 %v1964_v32, %v1922_v39 }
 0x349   : > { %2007 = vst [vmem:[%s3251_s14 + $0x10] sm:$0xff] %v2396_v41  ;;  %v1967_v45 = vadd.f32 %v1966_v43, %v1924_v42 }
 0x34b   : > { %v2399_v46 = vpack.c.bf16 %v1967_v45, %v1965_v44 }
 0x34d   : > { %2010 = vst [vmem:[%s3251_s14 + $0x28] sm:$0xff] %v2399_v46 }
 0x34e   : > { %2957 = shalt.err (!%p2954_p2)
}
 0x34f   : > { %s2958_s10 = scalar_lea.hbm %s3477_s16, 768  ;;  %s2962_s8 = scalar_lea.hbm %s3533_s5, 1536 }
 0x350   : > { %p2959_p6 = scmp.ne.s32.totalorder %s3477_s16, %s2958_s10  ;;  %p2963_p11 = scmp.lt.s32.totalorder %s3477_s16, %s3533_s5 }
 0x351   : > { %p2964_p1 = scmp.lt.s32.totalorder %s2962_s8, %s2958_s10 }
 0x352   : > { %p2960_p5 = pnand %p2959_p6, %p3558_p4 }
 0x353   : > { %p2965_p13 = por %p2964_p1, %p2963_p11 }
 0x354   : > { %p2961_p9 = pneg %p2960_p5 }
 0x356   : > { %p2966_p7 = pnand %p2965_p13, %p2961_p9 }
 0x358   : > { %2969 = shalt.err (!%p2966_p7)
}
 0x359   : > { %s3045_s25 = smov 384   ;;  %s3046_s13 = smov 768  }
 0x35a   : > { %s3047_s14 = smov 24  }
 0x35b   : > { %2422 = dma.vmem_to_hbm [thread:$0]  (%p3558_p4), %s3479_s28, 768, %s3477_s16, %s2012_s21, %s3045_s25, %s3046_s13, %s3047_s14  }
 0x35c PF: > { %s3559_s24 = sld [smem:[#allocation18_spill]]  ;;  %s2043_s30 = sand.u32 1, %s3012_s18  }
 0x35d   : > { %s3560_s1 = sld [smem:[#allocation17_spill]]  ;;  %s2044_s15 = scalar_lea.sflag [#allocation5], %s2043_s30 }
 0x362   : > { %p3561_p10 = scmp.ne.s32.totalorder %s3559_s24, 0 }
 0x363   : > { %p3562_p0 = scmp.ge.s32.totalorder %s3560_s1, 2 }
 0x365   : > { %p2442_p3 = pnand %p3562_p0, %p3561_p10 }
 0x367   : > { %p2443_p8 = pneg %p2442_p3 }
 0x369   : > { %3007 = dma.done.wait (%p2443_p8), %s2044_s15, 768  }
 0x36a   : > { %3009 = vsyncadd (%p2443_p8), %s2044_s15, 4294966528  ;;  %s23_s23 = sadd.s32 1, %s3560_s1   ;;  %s3563_s18 = smov %s3016_s19 }
 0x36b   : > { %p20_p12 = scmp.ge.s32.totalorder %s23_s23, 4   ;;  %s3564_s19 = smov %s3020_s20 }
 0x36c   : > { %s3565_s20 = smov %s3183_s7  ;;  %s3566_s21 = smov %s3028_s22 }
 0x36d   : > { %s3567_s22 = smov %s3569_s11  ;;  %22 = sbr.rel (!%p20_p12) target bundleno = 11 (0xb), region = 114 }
 0x372   :  { %2049 = vsyncpa [#allocation4], 1 }
 0x373   :  { %2051 = vsyncpa [#allocation4 + $0x1], 1 }
 0x374   :  { %2052 = vsyncpa [#allocation7], 1 }
 0x375   :  { %2053 = vsyncpa [#allocation10], 1 }
 0x376   :  { %2055 = vsyncpa [#allocation10 + $0x1], 1 }
 0x377   :  { %2056 = vsyncpa [#allocation5], 1 }
 0x378   :  { %2058 = vsyncpa [#allocation5 + $0x1], 1 }

</bundles_post_ra>
